<compile_context>
chip_gen: v7x
topology: tpu7x:2x2x1
jax: 0.10.0
libtpu: 0.0.40
codegen_flags: <defaults>
</compile_context>

<pallas_src>
import jax
import jax.numpy as jnp
from jax.experimental import pallas as pl
from jax.experimental.pallas import tpu as pltpu

EPS = 1e-5
_VMEM_LIMIT_BYTES = 32 * 1024 * 1024   # safe on v5e/v6e/v7x, above v5e default
_TILE_BYTES_TARGET = 4 * 1024 * 1024   # per-buffer tile budget (double-buffered)


def _pick_block(n, bytes_per_item, target=_TILE_BYTES_TARGET):
    """Largest divisor of `n` whose tile stays under `target` bytes.

    Also capped at ceil(n/2) so the grid has at least two steps (v7x has two
    TensorCores). Always returns a divisor >= 1, never the silent full-extent
    fallback."""
    if n <= 1:
        return max(n, 1)
    cap = max(1, min(target // max(bytes_per_item, 1), (n + 1) // 2))
    best = 1
    for d in range(1, n + 1):
        if d > cap:
            break
        if n % d == 0:
            best = d
    return best


def _compiler_params():
    return pltpu.CompilerParams(
        dimension_semantics=("parallel",),
        vmem_limit_bytes=_VMEM_LIMIT_BYTES,
    )


def _mxu_dot(a, b):
    """MXU matmul with bf16 inputs and f32 accumulation (used by both the
    Pallas kernel and the XLA reference so numerics stay aligned)."""
    return jnp.dot(a.astype(jnp.bfloat16), b.astype(jnp.bfloat16),
                   preferred_element_type=jnp.float32)


def _sigmoid(x):
    # Exact: sigmoid(x) = 0.5*(1 + tanh(x/2)); tanh runs on the EUP so the
    # serialized recurrence pays no VALU divide.
    return 0.5 * (jnp.tanh(0.5 * x) + 1.0)


def _gru_combine(gx, gh, h, hdim):
    """PyTorch GRU cell update from pre-computed fused gate projections.
    gx = x@Wih_cat + bih, gh = h@Whh_cat + bhh, columns ordered [r | z | n]."""
    r = _sigmoid(gx[:, 0:hdim] + gh[:, 0:hdim])
    z = _sigmoid(gx[:, hdim:2 * hdim] + gh[:, hdim:2 * hdim])
    n = jnp.tanh(gx[:, 2 * hdim:] + r * gh[:, 2 * hdim:])
    return (1.0 - z) * n + z * h


# ---------------------------------------------------------------------------
# Fused SegRNN forward kernel (RevIN norm -> embed -> GRU -> pmf -> denorm).
# ---------------------------------------------------------------------------


def _segrnn_fused_kernel(x_ref, we_ref, be_ref, wih_ref, whh_ref,
                         bih_ref, bhh_ref, pe_ref, wp_ref, bp_ref, y_ref):
    tb, C, L = x_ref.shape                  # block: tb batches, all channels
    S, H = we_ref.shape
    T = L // S                              # seg_num_x
    P = y_ref.shape[2]                      # pred_len
    SY = P // S                             # seg_num_y
    N = tb * C                              # rows handled by this block

    # ---- weights / biases: load (and bf16-cast for the MXU) once ----------
    we = we_ref[...].astype(jnp.bfloat16)
    wih = wih_ref[...].astype(jnp.bfloat16)
    whh = whh_ref[...].astype(jnp.bfloat16)
    wp = wp_ref[...].astype(jnp.bfloat16)
    be = be_ref[...]
    bih = bih_ref[...]
    bhh = bhh_ref[...]
    bp = bp_ref[...]

    # ---- RevIN 'norm' (affine=False): per (b, c) row statistics -----------
    x = x_ref[...].astype(jnp.float32)                         # (tb, C, L)
    inv_l = 1.0 / L
    mean = jnp.sum(x, axis=-1, keepdims=True) * inv_l          # (tb, C, 1)
    xc = x - mean
    var = jnp.sum(xc * xc, axis=-1, keepdims=True) * inv_l     # unbiased=False
    std = jnp.sqrt(var + EPS)
    xn = xc * (1.0 / std)        # per-row reciprocal hoisted off element path

    if tb == 1:                  # trivial squeeze (path taken in the demo)
        xn_rows, mean_rows, std_rows = xn[0], mean[0], std[0]
    else:                        # merge (tb, C) -> row axis for the matmuls
        xn_rows = xn.reshape(N, L)
        mean_rows = mean.reshape(N, 1)
        std_rows = std.reshape(N, 1)

    # ---- valueEmbedding + input-gate projections, hoisted over all T ------
    gx_steps = []
    for t in range(T):           # seg_num_x is small -> static unroll
        xt = xn_rows[:, t * S:(t + 1) * S]                     # (N, S)
        e_t = jnp.maximum(_mxu_dot(xt, we) + be, 0.0)          # (N, H)
        gx_steps.append(_mxu_dot(e_t, wih) + bih)              # (N, 3H)

    # ---- GRU recurrence: only h @ Whh_cat remains serialized --------------
    h = jnp.zeros((N, H), jnp.float32)
    for t in range(T):
        gh = _mxu_dot(h, whh) + bhh                            # (N, 3H)
        h = _gru_combine(gx_steps[t], gh, h, H)

    # ---- PMF decoder: one GRU step per (c, sy), shared projections --------
    gh_dec = _mxu_dot(h, whh) + bhh                            # (N, 3H), reused for all sy
    gx_dec = _mxu_dot(pe_ref[...], wih) + bih                  # (SY*C, 3H), batch independent

    y_parts = []
    for sy in range(SY):         # seg_num_y is small -> static unroll
        gx_c = gx_dec[sy * C:(sy + 1) * C, :]                  # (C, 3H)
        gx = gx_c if tb == 1 else jnp.tile(gx_c, (tb, 1))      # (N, 3H)
        hy = _gru_combine(gx, gh_dec, h, H)                    # (N, H)
        y_sy = _mxu_dot(hy, wp) + bp                           # (N, S)
        y_parts.append(y_sy * std_rows + mean_rows)            # fused RevIN denorm

    y = jnp.concatenate(y_parts, axis=-1)                      # (N, P), lane-dense
    if tb == 1:
        y_ref[0] = y.astype(y_ref.dtype)
    else:
        y_ref[...] = y.reshape(tb, C, P).astype(y_ref.dtype)


def segrnn_forward(x, params, cfg):
    """SegRNN_agent forward.  x: (B, seq_len, enc_in) -> (B, pred_len, enc_in)."""
    B, L, C = x.shape
    S, H = cfg["seg_len"], cfg["d_model"]
    SY = cfg["seg_num_y"]
    P = SY * S

    # (B, L, C) -> (B, C, L): lane-dense time axis (the permute the model
    # needs next anyway).
    x_bcl = jnp.transpose(x, (0, 2, 1)).astype(jnp.float32)

    # pos/channel embedding rows ordered (sy, c) so the kernel can take a
    # static sublane slice per sy; columns = [pos_emb(sy) | channel_emb(c)].
    d2 = H // 2
    pe_syc = jnp.concatenate(
        [jnp.broadcast_to(params["pos_emb"][:, None, :], (SY, C, d2)),
         jnp.broadcast_to(params["channel_emb"][None, :, :], (SY, C, d2))],
        axis=-1).reshape(SY * C, H).astype(jnp.float32)

    per_batch_bytes = (C * L + C * P) * 4
    tb = _pick_block(B, per_batch_bytes)
    # ~2x double-buffering of input+output blocks plus (small) weights.
    assert 4 * tb * per_batch_bytes + (1 << 20) <= _VMEM_LIMIT_BYTES

    grid_spec = pltpu.PrefetchScalarGridSpec(
        num_scalar_prefetch=0,
        grid=(B // tb,),
        in_specs=[
            pl.BlockSpec((tb, C, L), lambda i: (i, 0, 0)),
            pl.BlockSpec((S, H), lambda i: (0, 0)),
            pl.BlockSpec((1, H), lambda i: (0, 0)),
            pl.BlockSpec((H, 3 * H), lambda i: (0, 0)),
            pl.BlockSpec((H, 3 * H), lambda i: (0, 0)),
            pl.BlockSpec((1, 3 * H), lambda i: (0, 0)),
            pl.BlockSpec((1, 3 * H), lambda i: (0, 0)),
            pl.BlockSpec((SY * C, H), lambda i: (0, 0)),
            pl.BlockSpec((H, S), lambda i: (0, 0)),
            pl.BlockSpec((1, S), lambda i: (0, 0)),
        ],
        out_specs=pl.BlockSpec((tb, C, P), lambda i: (i, 0, 0)),
    )
    y_bcp = pl.pallas_call(
        _segrnn_fused_kernel,
        out_shape=jax.ShapeDtypeStruct((B, C, P), jnp.float32),
        grid_spec=grid_spec,
        compiler_params=_compiler_params(),
    )(x_bcl, params["we_t"], params["be"], params["wih_cat"],
      params["whh_cat"], params["bih_cat"], params["bhh_cat"],
      pe_syc, params["wp_t"], params["bp"])
    return jnp.transpose(y_bcp, (0, 2, 1))                     # (B, P, C)


# ---------------------------------------------------------------------------
# Pure-JAX (XLA) reference mirroring the PyTorch module.
# ---------------------------------------------------------------------------


def _reference_forward(x, params, cfg):
    B, L, C = x.shape
    S, H = cfg["seg_len"], cfg["d_model"]
    T, SY = cfg["seg_num_x"], cfg["seg_num_y"]

    # RevIN 'norm' (affine=False, subtract_last=False).
    mean = jnp.mean(x, axis=1, keepdims=True)                  # (B, 1, C)
    std = jnp.sqrt(jnp.var(x, axis=1, keepdims=True) + EPS)
    xn = (x - mean) / std

    # valueEmbedding + GRU encoder.
    xp = jnp.transpose(xn, (0, 2, 1)).reshape(B * C, T, S)
    h = jnp.zeros((B * C, H), jnp.float32)
    for t in range(T):
        e = jnp.maximum(_mxu_dot(xp[:, t, :], params["we_t"]) + params["be"], 0.0)
        gx = _mxu_dot(e, params["wih_cat"]) + params["bih_cat"]
        gh = _mxu_dot(h, params["whh_cat"]) + params["bhh_cat"]
        h = _gru_combine(gx, gh, h, H)

    # PMF decoder (channel_id=1): rows ordered (b, c, sy) as in PyTorch.
    d2 = H // 2
    pe = jnp.concatenate(
        [jnp.broadcast_to(params["pos_emb"][None, :, :], (C, SY, d2)),
         jnp.broadcast_to(params["channel_emb"][:, None, :], (C, SY, d2))],
        axis=-1).reshape(C * SY, H)
    pe = jnp.tile(pe, (B, 1))                                  # (B*C*SY, H)
    h0 = jnp.repeat(h, SY, axis=0)                             # (B*C*SY, H)
    gx = _mxu_dot(pe, params["wih_cat"]) + params["bih_cat"]
    gh = _mxu_dot(h0, params["whh_cat"]) + params["bhh_cat"]
    hy = _gru_combine(gx, gh, h0, H)
    y = _mxu_dot(hy, params["wp_t"]) + params["bp"]            # (B*C*SY, S)

    # RevIN 'denorm' and final (B, pred_len, C) layout.
    y = y.reshape(B, C, SY * S)
    y = y * jnp.transpose(std, (0, 2, 1)) + jnp.transpose(mean, (0, 2, 1))
    return jnp.transpose(y, (0, 2, 1))


if __name__ == "__main__":
    # Small SegRNN_agent configuration:
    #   enc_in=4, seq_len=32, pred_len=16, patch(seg)_len=8, d_model=32.
    B, C = 2, 4
    seq_len, pred_len, seg_len = 32, 16, 8
    d_model = 32
    cfg = dict(seg_len=seg_len, d_model=d_model, pred_len=pred_len,
               seg_num_x=seq_len // seg_len, seg_num_y=pred_len // seg_len)

    key = jax.random.PRNGKey(0)
    keys = jax.random.split(key, 11)

    def rnd(k, shape, scale=0.3):
        return jax.random.normal(k, shape, dtype=jnp.float32) * scale

    params = {
        # valueEmbedding: Linear(seg_len -> d_model), stored transposed.
        "we_t": rnd(keys[0], (seg_len, d_model)),
        "be": rnd(keys[1], (1, d_model), 0.1),
        # GRU weights, fused gate order [r | z | n], stored transposed (H, 3H)
        # (== torch weight_ih_l0.t() / weight_hh_l0.t() column-concatenated).
        "wih_cat": rnd(keys[2], (d_model, 3 * d_model)),
        "whh_cat": rnd(keys[3], (d_model, 3 * d_model)),
        "bih_cat": rnd(keys[4], (1, 3 * d_model), 0.1),
        "bhh_cat": rnd(keys[5], (1, 3 * d_model), 0.1),
        # predict: Linear(d_model -> seg_len), stored transposed.
        "wp_t": rnd(keys[6], (d_model, seg_len)),
        "bp": rnd(keys[7], (1, seg_len), 0.1),
        # pmf / channel_id embeddings.
        "pos_emb": rnd(keys[8], (cfg["seg_num_y"], d_model // 2), 1.0),
        "channel_emb": rnd(keys[9], (C, d_model // 2), 1.0),
    }
    x = jax.random.normal(keys[10], (B, seq_len, C), dtype=jnp.float32) * 2.0 + 0.5

    fwd = jax.jit(lambda xx, pp: segrnn_forward(xx, pp, cfg))
    y = fwd(x, params)
    jax.block_until_ready(y)
    assert y.shape == (B, pred_len, C), y.shape

    y_ref = _reference_forward(x, params, cfg)
    max_err = float(jnp.max(jnp.abs(y - y_ref)))
    # Tolerance accounts for the intentional bf16 MXU inputs (per the perf
    # review): Mosaic vs XLA can round borderline activations to adjacent
    # bf16 values, bounding the deviation at a few 1e-3 absolute.
    assert jnp.allclose(y, y_ref, atol=5e-3, rtol=5e-3), f"forward mismatch {max_err}"

    print("KERNEL_OK")
</pallas_src>

<mosaic_0001>
module attributes {stable_mosaic.version = 11 : i64} {
  func.func @_segrnn_fused_kernel(%arg0: i32, %arg1: memref<1x4x32xf32, #tpu.memory_space<vmem>>, %arg2: memref<8x32xf32, #tpu.memory_space<vmem>>, %arg3: memref<1x32xf32, #tpu.memory_space<vmem>>, %arg4: memref<32x96xf32, #tpu.memory_space<vmem>>, %arg5: memref<32x96xf32, #tpu.memory_space<vmem>>, %arg6: memref<1x96xf32, #tpu.memory_space<vmem>>, %arg7: memref<1x96xf32, #tpu.memory_space<vmem>>, %arg8: memref<8x32xf32, #tpu.memory_space<vmem>>, %arg9: memref<32x8xf32, #tpu.memory_space<vmem>>, %arg10: memref<1x8xf32, #tpu.memory_space<vmem>>, %arg11: memref<1x4x16xf32, #tpu.memory_space<vmem>>) attributes {dimension_semantics = [#tpu.dimension_semantics<parallel>], iteration_bounds = array<i64: 2>, scalar_prefetch = 0 : i64, scratch_operands = 0 : i64, tpu.core_type = #tpu.core_type<tc>, window_params = [{transform_indices = @transform_0, window_bounds = array<i64: 1, 4, 32>}, {pipeline_mode = #tpu.pipeline_mode<synchronous>, transform_indices = @transform_1, window_bounds = array<i64: 8, 32>}, {pipeline_mode = #tpu.pipeline_mode<synchronous>, transform_indices = @transform_2, window_bounds = array<i64: 1, 32>}, {pipeline_mode = #tpu.pipeline_mode<synchronous>, transform_indices = @transform_3, window_bounds = array<i64: 32, 96>}, {pipeline_mode = #tpu.pipeline_mode<synchronous>, transform_indices = @transform_4, window_bounds = array<i64: 32, 96>}, {pipeline_mode = #tpu.pipeline_mode<synchronous>, transform_indices = @transform_5, window_bounds = array<i64: 1, 96>}, {pipeline_mode = #tpu.pipeline_mode<synchronous>, transform_indices = @transform_6, window_bounds = array<i64: 1, 96>}, {pipeline_mode = #tpu.pipeline_mode<synchronous>, transform_indices = @transform_7, window_bounds = array<i64: 8, 32>}, {pipeline_mode = #tpu.pipeline_mode<synchronous>, transform_indices = @transform_8, window_bounds = array<i64: 32, 8>}, {pipeline_mode = #tpu.pipeline_mode<synchronous>, transform_indices = @transform_9, window_bounds = array<i64: 1, 8>}, {transform_indices = @transform_10, window_bounds = array<i64: 1, 4, 16>}]} {
    %c0 = arith.constant 0 : index
    %c0_0 = arith.constant 0 : index
    %0 = vector.load %arg2[%c0, %c0_0] : memref<8x32xf32, #tpu.memory_space<vmem>>, vector<8x32xf32>
    %1 = arith.truncf %0 : vector<8x32xf32> to vector<8x32xbf16>
    %c0_1 = arith.constant 0 : index
    %c0_2 = arith.constant 0 : index
    %2 = vector.load %arg4[%c0_1, %c0_2] : memref<32x96xf32, #tpu.memory_space<vmem>>, vector<32x96xf32>
    %3 = arith.truncf %2 : vector<32x96xf32> to vector<32x96xbf16>
    %c0_3 = arith.constant 0 : index
    %c0_4 = arith.constant 0 : index
    %4 = vector.load %arg5[%c0_3, %c0_4] : memref<32x96xf32, #tpu.memory_space<vmem>>, vector<32x96xf32>
    %5 = arith.truncf %4 : vector<32x96xf32> to vector<32x96xbf16>
    %c0_5 = arith.constant 0 : index
    %c0_6 = arith.constant 0 : index
    %6 = vector.load %arg9[%c0_5, %c0_6] : memref<32x8xf32, #tpu.memory_space<vmem>>, vector<32x8xf32>
    %7 = arith.truncf %6 : vector<32x8xf32> to vector<32x8xbf16>
    %c0_7 = arith.constant 0 : index
    %c0_8 = arith.constant 0 : index
    %8 = vector.load %arg3[%c0_7, %c0_8] : memref<1x32xf32, #tpu.memory_space<vmem>>, vector<1x32xf32>
    %c0_9 = arith.constant 0 : index
    %c0_10 = arith.constant 0 : index
    %9 = vector.load %arg6[%c0_9, %c0_10] : memref<1x96xf32, #tpu.memory_space<vmem>>, vector<1x96xf32>
    %c0_11 = arith.constant 0 : index
    %c0_12 = arith.constant 0 : index
    %10 = vector.load %arg7[%c0_11, %c0_12] : memref<1x96xf32, #tpu.memory_space<vmem>>, vector<1x96xf32>
    %c0_13 = arith.constant 0 : index
    %c0_14 = arith.constant 0 : index
    %11 = vector.load %arg10[%c0_13, %c0_14] : memref<1x8xf32, #tpu.memory_space<vmem>>, vector<1x8xf32>
    %c0_15 = arith.constant 0 : index
    %c0_16 = arith.constant 0 : index
    %c0_17 = arith.constant 0 : index
    %12 = vector.load %arg1[%c0_15, %c0_16, %c0_17] : memref<1x4x32xf32, #tpu.memory_space<vmem>>, vector<1x4x32xf32>
    %cst = arith.constant dense<0.000000e+00> : vector<1x4xf32>
    %13 = vector.multi_reduction <add>, %12, %cst [2] : vector<1x4x32xf32> to vector<1x4xf32>
    %14 = vector.shape_cast %13 : vector<1x4xf32> to vector<1x4x1xf32>
    %cst_18 = arith.constant 3.125000e-02 : f32
    %15 = vector.broadcast %cst_18 : f32 to vector<1x4x1xf32>
    %16 = arith.mulf %14, %15 : vector<1x4x1xf32>
    %17 = vector.broadcast %16 : vector<1x4x1xf32> to vector<1x4x32xf32>
    %18 = arith.subf %12, %17 : vector<1x4x32xf32>
    %19 = arith.mulf %18, %18 : vector<1x4x32xf32>
    %cst_19 = arith.constant dense<0.000000e+00> : vector<1x4xf32>
    %20 = vector.multi_reduction <add>, %19, %cst_19 [2] : vector<1x4x32xf32> to vector<1x4xf32>
    %21 = vector.shape_cast %20 : vector<1x4xf32> to vector<1x4x1xf32>
    %cst_20 = arith.constant 3.125000e-02 : f32
    %22 = vector.broadcast %cst_20 : f32 to vector<1x4x1xf32>
    %23 = arith.mulf %21, %22 : vector<1x4x1xf32>
    %cst_21 = arith.constant 9.99999974E-6 : f32
    %24 = vector.broadcast %cst_21 : f32 to vector<1x4x1xf32>
    %25 = arith.addf %23, %24 : vector<1x4x1xf32>
    %26 = math.sqrt %25 : vector<1x4x1xf32>
    %cst_22 = arith.constant 1.000000e+00 : f32
    %27 = vector.broadcast %cst_22 : f32 to vector<1x4x1xf32>
    %28 = arith.divf %27, %26 : vector<1x4x1xf32>
    %29 = vector.broadcast %28 : vector<1x4x1xf32> to vector<1x4x32xf32>
    %30 = arith.mulf %18, %29 : vector<1x4x32xf32>
    %31 = vector.shape_cast %30 : vector<1x4x32xf32> to vector<4x32xf32>
    %32 = vector.shape_cast %16 : vector<1x4x1xf32> to vector<4x1xf32>
    %33 = vector.shape_cast %26 : vector<1x4x1xf32> to vector<4x1xf32>
    %34 = vector.extract_strided_slice %31 {offsets = [0, 0], sizes = [4, 8], strides = [1, 1]} : vector<4x32xf32> to vector<4x8xf32>
    %35 = arith.truncf %34 : vector<4x8xf32> to vector<4x8xbf16>
    %cst_23 = arith.constant dense<0.000000e+00> : vector<4x32xf32>
    %36 = tpu.matmul %35, %1, %cst_23 {dimension_numbers = #tpu.dot_dimension_numbers<[1], [0], [0], [1], [0, 0, 1, 1], [], []>} : vector<4x8xbf16>, vector<8x32xbf16>, vector<4x32xf32> -> vector<4x32xf32>
    %37 = vector.broadcast %8 : vector<1x32xf32> to vector<4x32xf32>
    %38 = arith.addf %36, %37 : vector<4x32xf32>
    %cst_24 = arith.constant 0.000000e+00 : f32
    %39 = vector.broadcast %cst_24 : f32 to vector<4x32xf32>
    %40 = arith.maximumf %38, %39 : vector<4x32xf32>
    %41 = arith.truncf %40 : vector<4x32xf32> to vector<4x32xbf16>
    %cst_25 = arith.constant dense<0.000000e+00> : vector<4x96xf32>
    %42 = tpu.matmul %41, %3, %cst_25 {dimension_numbers = #tpu.dot_dimension_numbers<[1], [0], [0], [1], [0, 0, 1, 1], [], []>} : vector<4x32xbf16>, vector<32x96xbf16>, vector<4x96xf32> -> vector<4x96xf32>
    %43 = vector.broadcast %9 : vector<1x96xf32> to vector<4x96xf32>
    %44 = arith.addf %42, %43 : vector<4x96xf32>
    %45 = vector.extract_strided_slice %31 {offsets = [0, 8], sizes = [4, 8], strides = [1, 1]} : vector<4x32xf32> to vector<4x8xf32>
    %46 = arith.truncf %45 : vector<4x8xf32> to vector<4x8xbf16>
    %cst_26 = arith.constant dense<0.000000e+00> : vector<4x32xf32>
    %47 = tpu.matmul %46, %1, %cst_26 {dimension_numbers = #tpu.dot_dimension_numbers<[1], [0], [0], [1], [0, 0, 1, 1], [], []>} : vector<4x8xbf16>, vector<8x32xbf16>, vector<4x32xf32> -> vector<4x32xf32>
    %48 = vector.broadcast %8 : vector<1x32xf32> to vector<4x32xf32>
    %49 = arith.addf %47, %48 : vector<4x32xf32>
    %cst_27 = arith.constant 0.000000e+00 : f32
    %50 = vector.broadcast %cst_27 : f32 to vector<4x32xf32>
    %51 = arith.maximumf %49, %50 : vector<4x32xf32>
    %52 = arith.truncf %51 : vector<4x32xf32> to vector<4x32xbf16>
    %cst_28 = arith.constant dense<0.000000e+00> : vector<4x96xf32>
    %53 = tpu.matmul %52, %3, %cst_28 {dimension_numbers = #tpu.dot_dimension_numbers<[1], [0], [0], [1], [0, 0, 1, 1], [], []>} : vector<4x32xbf16>, vector<32x96xbf16>, vector<4x96xf32> -> vector<4x96xf32>
    %54 = vector.broadcast %9 : vector<1x96xf32> to vector<4x96xf32>
    %55 = arith.addf %53, %54 : vector<4x96xf32>
    %56 = vector.extract_strided_slice %31 {offsets = [0, 16], sizes = [4, 8], strides = [1, 1]} : vector<4x32xf32> to vector<4x8xf32>
    %57 = arith.truncf %56 : vector<4x8xf32> to vector<4x8xbf16>
    %cst_29 = arith.constant dense<0.000000e+00> : vector<4x32xf32>
    %58 = tpu.matmul %57, %1, %cst_29 {dimension_numbers = #tpu.dot_dimension_numbers<[1], [0], [0], [1], [0, 0, 1, 1], [], []>} : vector<4x8xbf16>, vector<8x32xbf16>, vector<4x32xf32> -> vector<4x32xf32>
    %59 = vector.broadcast %8 : vector<1x32xf32> to vector<4x32xf32>
    %60 = arith.addf %58, %59 : vector<4x32xf32>
    %cst_30 = arith.constant 0.000000e+00 : f32
    %61 = vector.broadcast %cst_30 : f32 to vector<4x32xf32>
    %62 = arith.maximumf %60, %61 : vector<4x32xf32>
    %63 = arith.truncf %62 : vector<4x32xf32> to vector<4x32xbf16>
    %cst_31 = arith.constant dense<0.000000e+00> : vector<4x96xf32>
    %64 = tpu.matmul %63, %3, %cst_31 {dimension_numbers = #tpu.dot_dimension_numbers<[1], [0], [0], [1], [0, 0, 1, 1], [], []>} : vector<4x32xbf16>, vector<32x96xbf16>, vector<4x96xf32> -> vector<4x96xf32>
    %65 = vector.broadcast %9 : vector<1x96xf32> to vector<4x96xf32>
    %66 = arith.addf %64, %65 : vector<4x96xf32>
    %67 = vector.extract_strided_slice %31 {offsets = [0, 24], sizes = [4, 8], strides = [1, 1]} : vector<4x32xf32> to vector<4x8xf32>
    %68 = arith.truncf %67 : vector<4x8xf32> to vector<4x8xbf16>
    %cst_32 = arith.constant dense<0.000000e+00> : vector<4x32xf32>
    %69 = tpu.matmul %68, %1, %cst_32 {dimension_numbers = #tpu.dot_dimension_numbers<[1], [0], [0], [1], [0, 0, 1, 1], [], []>} : vector<4x8xbf16>, vector<8x32xbf16>, vector<4x32xf32> -> vector<4x32xf32>
    %70 = vector.broadcast %8 : vector<1x32xf32> to vector<4x32xf32>
    %71 = arith.addf %69, %70 : vector<4x32xf32>
    %cst_33 = arith.constant 0.000000e+00 : f32
    %72 = vector.broadcast %cst_33 : f32 to vector<4x32xf32>
    %73 = arith.maximumf %71, %72 : vector<4x32xf32>
    %74 = arith.truncf %73 : vector<4x32xf32> to vector<4x32xbf16>
    %cst_34 = arith.constant dense<0.000000e+00> : vector<4x96xf32>
    %75 = tpu.matmul %74, %3, %cst_34 {dimension_numbers = #tpu.dot_dimension_numbers<[1], [0], [0], [1], [0, 0, 1, 1], [], []>} : vector<4x32xbf16>, vector<32x96xbf16>, vector<4x96xf32> -> vector<4x96xf32>
    %76 = vector.broadcast %9 : vector<1x96xf32> to vector<4x96xf32>
    %77 = arith.addf %75, %76 : vector<4x96xf32>
    %cst_35 = arith.constant 0.000000e+00 : f32
    %78 = vector.broadcast %cst_35 : f32 to vector<4x32xf32>
    %79 = arith.truncf %78 : vector<4x32xf32> to vector<4x32xbf16>
    %cst_36 = arith.constant dense<0.000000e+00> : vector<4x96xf32>
    %80 = tpu.matmul %79, %5, %cst_36 {dimension_numbers = #tpu.dot_dimension_numbers<[1], [0], [0], [1], [0, 0, 1, 1], [], []>} : vector<4x32xbf16>, vector<32x96xbf16>, vector<4x96xf32> -> vector<4x96xf32>
    %81 = vector.broadcast %10 : vector<1x96xf32> to vector<4x96xf32>
    %82 = arith.addf %80, %81 : vector<4x96xf32>
    %83 = vector.extract_strided_slice %44 {offsets = [0, 0], sizes = [4, 32], strides = [1, 1]} : vector<4x96xf32> to vector<4x32xf32>
    %84 = vector.extract_strided_slice %82 {offsets = [0, 0], sizes = [4, 32], strides = [1, 1]} : vector<4x96xf32> to vector<4x32xf32>
    %85 = arith.addf %83, %84 : vector<4x32xf32>
    %cst_37 = arith.constant 5.000000e-01 : f32
    %86 = vector.broadcast %cst_37 : f32 to vector<4x32xf32>
    %87 = arith.mulf %86, %85 : vector<4x32xf32>
    %88 = math.tanh %87 : vector<4x32xf32>
    %cst_38 = arith.constant 1.000000e+00 : f32
    %89 = vector.broadcast %cst_38 : f32 to vector<4x32xf32>
    %90 = arith.addf %88, %89 : vector<4x32xf32>
    %cst_39 = arith.constant 5.000000e-01 : f32
    %91 = vector.broadcast %cst_39 : f32 to vector<4x32xf32>
    %92 = arith.mulf %91, %90 : vector<4x32xf32>
    %93 = vector.extract_strided_slice %44 {offsets = [0, 32], sizes = [4, 32], strides = [1, 1]} : vector<4x96xf32> to vector<4x32xf32>
    %94 = vector.extract_strided_slice %82 {offsets = [0, 32], sizes = [4, 32], strides = [1, 1]} : vector<4x96xf32> to vector<4x32xf32>
    %95 = arith.addf %93, %94 : vector<4x32xf32>
    %cst_40 = arith.constant 5.000000e-01 : f32
    %96 = vector.broadcast %cst_40 : f32 to vector<4x32xf32>
    %97 = arith.mulf %96, %95 : vector<4x32xf32>
    %98 = math.tanh %97 : vector<4x32xf32>
    %cst_41 = arith.constant 1.000000e+00 : f32
    %99 = vector.broadcast %cst_41 : f32 to vector<4x32xf32>
    %100 = arith.addf %98, %99 : vector<4x32xf32>
    %cst_42 = arith.constant 5.000000e-01 : f32
    %101 = vector.broadcast %cst_42 : f32 to vector<4x32xf32>
    %102 = arith.mulf %101, %100 : vector<4x32xf32>
    %103 = vector.extract_strided_slice %44 {offsets = [0, 64], sizes = [4, 32], strides = [1, 1]} : vector<4x96xf32> to vector<4x32xf32>
    %104 = vector.extract_strided_slice %82 {offsets = [0, 64], sizes = [4, 32], strides = [1, 1]} : vector<4x96xf32> to vector<4x32xf32>
    %105 = arith.mulf %92, %104 : vector<4x32xf32>
    %106 = arith.addf %103, %105 : vector<4x32xf32>
    %107 = math.tanh %106 : vector<4x32xf32>
    %cst_43 = arith.constant 1.000000e+00 : f32
    %108 = vector.broadcast %cst_43 : f32 to vector<4x32xf32>
    %109 = arith.subf %108, %102 : vector<4x32xf32>
    %110 = arith.mulf %109, %107 : vector<4x32xf32>
    %111 = arith.mulf %102, %78 : vector<4x32xf32>
    %112 = arith.addf %110, %111 : vector<4x32xf32>
    %113 = arith.truncf %112 : vector<4x32xf32> to vector<4x32xbf16>
    %cst_44 = arith.constant dense<0.000000e+00> : vector<4x96xf32>
    %114 = tpu.matmul %113, %5, %cst_44 {dimension_numbers = #tpu.dot_dimension_numbers<[1], [0], [0], [1], [0, 0, 1, 1], [], []>} : vector<4x32xbf16>, vector<32x96xbf16>, vector<4x96xf32> -> vector<4x96xf32>
    %115 = vector.broadcast %10 : vector<1x96xf32> to vector<4x96xf32>
    %116 = arith.addf %114, %115 : vector<4x96xf32>
    %117 = vector.extract_strided_slice %55 {offsets = [0, 0], sizes = [4, 32], strides = [1, 1]} : vector<4x96xf32> to vector<4x32xf32>
    %118 = vector.extract_strided_slice %116 {offsets = [0, 0], sizes = [4, 32], strides = [1, 1]} : vector<4x96xf32> to vector<4x32xf32>
    %119 = arith.addf %117, %118 : vector<4x32xf32>
    %cst_45 = arith.constant 5.000000e-01 : f32
    %120 = vector.broadcast %cst_45 : f32 to vector<4x32xf32>
    %121 = arith.mulf %120, %119 : vector<4x32xf32>
    %122 = math.tanh %121 : vector<4x32xf32>
    %cst_46 = arith.constant 1.000000e+00 : f32
    %123 = vector.broadcast %cst_46 : f32 to vector<4x32xf32>
    %124 = arith.addf %122, %123 : vector<4x32xf32>
    %cst_47 = arith.constant 5.000000e-01 : f32
    %125 = vector.broadcast %cst_47 : f32 to vector<4x32xf32>
    %126 = arith.mulf %125, %124 : vector<4x32xf32>
    %127 = vector.extract_strided_slice %55 {offsets = [0, 32], sizes = [4, 32], strides = [1, 1]} : vector<4x96xf32> to vector<4x32xf32>
    %128 = vector.extract_strided_slice %116 {offsets = [0, 32], sizes = [4, 32], strides = [1, 1]} : vector<4x96xf32> to vector<4x32xf32>
    %129 = arith.addf %127, %128 : vector<4x32xf32>
    %cst_48 = arith.constant 5.000000e-01 : f32
    %130 = vector.broadcast %cst_48 : f32 to vector<4x32xf32>
    %131 = arith.mulf %130, %129 : vector<4x32xf32>
    %132 = math.tanh %131 : vector<4x32xf32>
    %cst_49 = arith.constant 1.000000e+00 : f32
    %133 = vector.broadcast %cst_49 : f32 to vector<4x32xf32>
    %134 = arith.addf %132, %133 : vector<4x32xf32>
    %cst_50 = arith.constant 5.000000e-01 : f32
    %135 = vector.broadcast %cst_50 : f32 to vector<4x32xf32>
    %136 = arith.mulf %135, %134 : vector<4x32xf32>
    %137 = vector.extract_strided_slice %55 {offsets = [0, 64], sizes = [4, 32], strides = [1, 1]} : vector<4x96xf32> to vector<4x32xf32>
    %138 = vector.extract_strided_slice %116 {offsets = [0, 64], sizes = [4, 32], strides = [1, 1]} : vector<4x96xf32> to vector<4x32xf32>
    %139 = arith.mulf %126, %138 : vector<4x32xf32>
    %140 = arith.addf %137, %139 : vector<4x32xf32>
    %141 = math.tanh %140 : vector<4x32xf32>
    %cst_51 = arith.constant 1.000000e+00 : f32
    %142 = vector.broadcast %cst_51 : f32 to vector<4x32xf32>
    %143 = arith.subf %142, %136 : vector<4x32xf32>
    %144 = arith.mulf %143, %141 : vector<4x32xf32>
    %145 = arith.mulf %136, %112 : vector<4x32xf32>
    %146 = arith.addf %144, %145 : vector<4x32xf32>
    %147 = arith.truncf %146 : vector<4x32xf32> to vector<4x32xbf16>
    %cst_52 = arith.constant dense<0.000000e+00> : vector<4x96xf32>
    %148 = tpu.matmul %147, %5, %cst_52 {dimension_numbers = #tpu.dot_dimension_numbers<[1], [0], [0], [1], [0, 0, 1, 1], [], []>} : vector<4x32xbf16>, vector<32x96xbf16>, vector<4x96xf32> -> vector<4x96xf32>
    %149 = vector.broadcast %10 : vector<1x96xf32> to vector<4x96xf32>
    %150 = arith.addf %148, %149 : vector<4x96xf32>
    %151 = vector.extract_strided_slice %66 {offsets = [0, 0], sizes = [4, 32], strides = [1, 1]} : vector<4x96xf32> to vector<4x32xf32>
    %152 = vector.extract_strided_slice %150 {offsets = [0, 0], sizes = [4, 32], strides = [1, 1]} : vector<4x96xf32> to vector<4x32xf32>
    %153 = arith.addf %151, %152 : vector<4x32xf32>
    %cst_53 = arith.constant 5.000000e-01 : f32
    %154 = vector.broadcast %cst_53 : f32 to vector<4x32xf32>
    %155 = arith.mulf %154, %153 : vector<4x32xf32>
    %156 = math.tanh %155 : vector<4x32xf32>
    %cst_54 = arith.constant 1.000000e+00 : f32
    %157 = vector.broadcast %cst_54 : f32 to vector<4x32xf32>
    %158 = arith.addf %156, %157 : vector<4x32xf32>
    %cst_55 = arith.constant 5.000000e-01 : f32
    %159 = vector.broadcast %cst_55 : f32 to vector<4x32xf32>
    %160 = arith.mulf %159, %158 : vector<4x32xf32>
    %161 = vector.extract_strided_slice %66 {offsets = [0, 32], sizes = [4, 32], strides = [1, 1]} : vector<4x96xf32> to vector<4x32xf32>
    %162 = vector.extract_strided_slice %150 {offsets = [0, 32], sizes = [4, 32], strides = [1, 1]} : vector<4x96xf32> to vector<4x32xf32>
    %163 = arith.addf %161, %162 : vector<4x32xf32>
    %cst_56 = arith.constant 5.000000e-01 : f32
    %164 = vector.broadcast %cst_56 : f32 to vector<4x32xf32>
    %165 = arith.mulf %164, %163 : vector<4x32xf32>
    %166 = math.tanh %165 : vector<4x32xf32>
    %cst_57 = arith.constant 1.000000e+00 : f32
    %167 = vector.broadcast %cst_57 : f32 to vector<4x32xf32>
    %168 = arith.addf %166, %167 : vector<4x32xf32>
    %cst_58 = arith.constant 5.000000e-01 : f32
    %169 = vector.broadcast %cst_58 : f32 to vector<4x32xf32>
    %170 = arith.mulf %169, %168 : vector<4x32xf32>
    %171 = vector.extract_strided_slice %66 {offsets = [0, 64], sizes = [4, 32], strides = [1, 1]} : vector<4x96xf32> to vector<4x32xf32>
    %172 = vector.extract_strided_slice %150 {offsets = [0, 64], sizes = [4, 32], strides = [1, 1]} : vector<4x96xf32> to vector<4x32xf32>
    %173 = arith.mulf %160, %172 : vector<4x32xf32>
    %174 = arith.addf %171, %173 : vector<4x32xf32>
    %175 = math.tanh %174 : vector<4x32xf32>
    %cst_59 = arith.constant 1.000000e+00 : f32
    %176 = vector.broadcast %cst_59 : f32 to vector<4x32xf32>
    %177 = arith.subf %176, %170 : vector<4x32xf32>
    %178 = arith.mulf %177, %175 : vector<4x32xf32>
    %179 = arith.mulf %170, %146 : vector<4x32xf32>
    %180 = arith.addf %178, %179 : vector<4x32xf32>
    %181 = arith.truncf %180 : vector<4x32xf32> to vector<4x32xbf16>
    %cst_60 = arith.constant dense<0.000000e+00> : vector<4x96xf32>
    %182 = tpu.matmul %181, %5, %cst_60 {dimension_numbers = #tpu.dot_dimension_numbers<[1], [0], [0], [1], [0, 0, 1, 1], [], []>} : vector<4x32xbf16>, vector<32x96xbf16>, vector<4x96xf32> -> vector<4x96xf32>
    %183 = vector.broadcast %10 : vector<1x96xf32> to vector<4x96xf32>
    %184 = arith.addf %182, %183 : vector<4x96xf32>
    %185 = vector.extract_strided_slice %77 {offsets = [0, 0], sizes = [4, 32], strides = [1, 1]} : vector<4x96xf32> to vector<4x32xf32>
    %186 = vector.extract_strided_slice %184 {offsets = [0, 0], sizes = [4, 32], strides = [1, 1]} : vector<4x96xf32> to vector<4x32xf32>
    %187 = arith.addf %185, %186 : vector<4x32xf32>
    %cst_61 = arith.constant 5.000000e-01 : f32
    %188 = vector.broadcast %cst_61 : f32 to vector<4x32xf32>
    %189 = arith.mulf %188, %187 : vector<4x32xf32>
    %190 = math.tanh %189 : vector<4x32xf32>
    %cst_62 = arith.constant 1.000000e+00 : f32
    %191 = vector.broadcast %cst_62 : f32 to vector<4x32xf32>
    %192 = arith.addf %190, %191 : vector<4x32xf32>
    %cst_63 = arith.constant 5.000000e-01 : f32
    %193 = vector.broadcast %cst_63 : f32 to vector<4x32xf32>
    %194 = arith.mulf %193, %192 : vector<4x32xf32>
    %195 = vector.extract_strided_slice %77 {offsets = [0, 32], sizes = [4, 32], strides = [1, 1]} : vector<4x96xf32> to vector<4x32xf32>
    %196 = vector.extract_strided_slice %184 {offsets = [0, 32], sizes = [4, 32], strides = [1, 1]} : vector<4x96xf32> to vector<4x32xf32>
    %197 = arith.addf %195, %196 : vector<4x32xf32>
    %cst_64 = arith.constant 5.000000e-01 : f32
    %198 = vector.broadcast %cst_64 : f32 to vector<4x32xf32>
    %199 = arith.mulf %198, %197 : vector<4x32xf32>
    %200 = math.tanh %199 : vector<4x32xf32>
    %cst_65 = arith.constant 1.000000e+00 : f32
    %201 = vector.broadcast %cst_65 : f32 to vector<4x32xf32>
    %202 = arith.addf %200, %201 : vector<4x32xf32>
    %cst_66 = arith.constant 5.000000e-01 : f32
    %203 = vector.broadcast %cst_66 : f32 to vector<4x32xf32>
    %204 = arith.mulf %203, %202 : vector<4x32xf32>
    %205 = vector.extract_strided_slice %77 {offsets = [0, 64], sizes = [4, 32], strides = [1, 1]} : vector<4x96xf32> to vector<4x32xf32>
    %206 = vector.extract_strided_slice %184 {offsets = [0, 64], sizes = [4, 32], strides = [1, 1]} : vector<4x96xf32> to vector<4x32xf32>
    %207 = arith.mulf %194, %206 : vector<4x32xf32>
    %208 = arith.addf %205, %207 : vector<4x32xf32>
    %209 = math.tanh %208 : vector<4x32xf32>
    %cst_67 = arith.constant 1.000000e+00 : f32
    %210 = vector.broadcast %cst_67 : f32 to vector<4x32xf32>
    %211 = arith.subf %210, %204 : vector<4x32xf32>
    %212 = arith.mulf %211, %209 : vector<4x32xf32>
    %213 = arith.mulf %204, %180 : vector<4x32xf32>
    %214 = arith.addf %212, %213 : vector<4x32xf32>
    %215 = arith.truncf %214 : vector<4x32xf32> to vector<4x32xbf16>
    %cst_68 = arith.constant dense<0.000000e+00> : vector<4x96xf32>
    %216 = tpu.matmul %215, %5, %cst_68 {dimension_numbers = #tpu.dot_dimension_numbers<[1], [0], [0], [1], [0, 0, 1, 1], [], []>} : vector<4x32xbf16>, vector<32x96xbf16>, vector<4x96xf32> -> vector<4x96xf32>
    %217 = vector.broadcast %10 : vector<1x96xf32> to vector<4x96xf32>
    %218 = arith.addf %216, %217 : vector<4x96xf32>
    %c0_69 = arith.constant 0 : index
    %c0_70 = arith.constant 0 : index
    %219 = vector.load %arg8[%c0_69, %c0_70] : memref<8x32xf32, #tpu.memory_space<vmem>>, vector<8x32xf32>
    %220 = arith.truncf %219 : vector<8x32xf32> to vector<8x32xbf16>
    %cst_71 = arith.constant dense<0.000000e+00> : vector<8x96xf32>
    %221 = tpu.matmul %220, %3, %cst_71 {dimension_numbers = #tpu.dot_dimension_numbers<[1], [0], [0], [1], [0, 0, 1, 1], [], []>} : vector<8x32xbf16>, vector<32x96xbf16>, vector<8x96xf32> -> vector<8x96xf32>
    %222 = vector.broadcast %9 : vector<1x96xf32> to vector<8x96xf32>
    %223 = arith.addf %221, %222 : vector<8x96xf32>
    %224 = vector.extract_strided_slice %223 {offsets = [0, 0], sizes = [4, 96], strides = [1, 1]} : vector<8x96xf32> to vector<4x96xf32>
    %225 = vector.extract_strided_slice %224 {offsets = [0, 0], sizes = [4, 32], strides = [1, 1]} : vector<4x96xf32> to vector<4x32xf32>
    %226 = vector.extract_strided_slice %218 {offsets = [0, 0], sizes = [4, 32], strides = [1, 1]} : vector<4x96xf32> to vector<4x32xf32>
    %227 = arith.addf %225, %226 : vector<4x32xf32>
    %cst_72 = arith.constant 5.000000e-01 : f32
    %228 = vector.broadcast %cst_72 : f32 to vector<4x32xf32>
    %229 = arith.mulf %228, %227 : vector<4x32xf32>
    %230 = math.tanh %229 : vector<4x32xf32>
    %cst_73 = arith.constant 1.000000e+00 : f32
    %231 = vector.broadcast %cst_73 : f32 to vector<4x32xf32>
    %232 = arith.addf %230, %231 : vector<4x32xf32>
    %cst_74 = arith.constant 5.000000e-01 : f32
    %233 = vector.broadcast %cst_74 : f32 to vector<4x32xf32>
    %234 = arith.mulf %233, %232 : vector<4x32xf32>
    %235 = vector.extract_strided_slice %224 {offsets = [0, 32], sizes = [4, 32], strides = [1, 1]} : vector<4x96xf32> to vector<4x32xf32>
    %236 = vector.extract_strided_slice %218 {offsets = [0, 32], sizes = [4, 32], strides = [1, 1]} : vector<4x96xf32> to vector<4x32xf32>
    %237 = arith.addf %235, %236 : vector<4x32xf32>
    %cst_75 = arith.constant 5.000000e-01 : f32
    %238 = vector.broadcast %cst_75 : f32 to vector<4x32xf32>
    %239 = arith.mulf %238, %237 : vector<4x32xf32>
    %240 = math.tanh %239 : vector<4x32xf32>
    %cst_76 = arith.constant 1.000000e+00 : f32
    %241 = vector.broadcast %cst_76 : f32 to vector<4x32xf32>
    %242 = arith.addf %240, %241 : vector<4x32xf32>
    %cst_77 = arith.constant 5.000000e-01 : f32
    %243 = vector.broadcast %cst_77 : f32 to vector<4x32xf32>
    %244 = arith.mulf %243, %242 : vector<4x32xf32>
    %245 = vector.extract_strided_slice %224 {offsets = [0, 64], sizes = [4, 32], strides = [1, 1]} : vector<4x96xf32> to vector<4x32xf32>
    %246 = vector.extract_strided_slice %218 {offsets = [0, 64], sizes = [4, 32], strides = [1, 1]} : vector<4x96xf32> to vector<4x32xf32>
    %247 = arith.mulf %234, %246 : vector<4x32xf32>
    %248 = arith.addf %245, %247 : vector<4x32xf32>
    %249 = math.tanh %248 : vector<4x32xf32>
    %cst_78 = arith.constant 1.000000e+00 : f32
    %250 = vector.broadcast %cst_78 : f32 to vector<4x32xf32>
    %251 = arith.subf %250, %244 : vector<4x32xf32>
    %252 = arith.mulf %251, %249 : vector<4x32xf32>
    %253 = arith.mulf %244, %214 : vector<4x32xf32>
    %254 = arith.addf %252, %253 : vector<4x32xf32>
    %255 = arith.truncf %254 : vector<4x32xf32> to vector<4x32xbf16>
    %cst_79 = arith.constant dense<0.000000e+00> : vector<4x8xf32>
    %256 = tpu.matmul %255, %7, %cst_79 {dimension_numbers = #tpu.dot_dimension_numbers<[1], [0], [0], [1], [0, 0, 1, 1], [], []>} : vector<4x32xbf16>, vector<32x8xbf16>, vector<4x8xf32> -> vector<4x8xf32>
    %257 = vector.broadcast %11 : vector<1x8xf32> to vector<4x8xf32>
    %258 = arith.addf %256, %257 : vector<4x8xf32>
    %259 = vector.broadcast %33 : vector<4x1xf32> to vector<4x8xf32>
    %260 = arith.mulf %258, %259 : vector<4x8xf32>
    %261 = vector.broadcast %32 : vector<4x1xf32> to vector<4x8xf32>
    %262 = arith.addf %260, %261 : vector<4x8xf32>
    %263 = vector.extract_strided_slice %223 {offsets = [4, 0], sizes = [4, 96], strides = [1, 1]} : vector<8x96xf32> to vector<4x96xf32>
    %264 = vector.extract_strided_slice %263 {offsets = [0, 0], sizes = [4, 32], strides = [1, 1]} : vector<4x96xf32> to vector<4x32xf32>
    %265 = vector.extract_strided_slice %218 {offsets = [0, 0], sizes = [4, 32], strides = [1, 1]} : vector<4x96xf32> to vector<4x32xf32>
    %266 = arith.addf %264, %265 : vector<4x32xf32>
    %cst_80 = arith.constant 5.000000e-01 : f32
    %267 = vector.broadcast %cst_80 : f32 to vector<4x32xf32>
    %268 = arith.mulf %267, %266 : vector<4x32xf32>
    %269 = math.tanh %268 : vector<4x32xf32>
    %cst_81 = arith.constant 1.000000e+00 : f32
    %270 = vector.broadcast %cst_81 : f32 to vector<4x32xf32>
    %271 = arith.addf %269, %270 : vector<4x32xf32>
    %cst_82 = arith.constant 5.000000e-01 : f32
    %272 = vector.broadcast %cst_82 : f32 to vector<4x32xf32>
    %273 = arith.mulf %272, %271 : vector<4x32xf32>
    %274 = vector.extract_strided_slice %263 {offsets = [0, 32], sizes = [4, 32], strides = [1, 1]} : vector<4x96xf32> to vector<4x32xf32>
    %275 = vector.extract_strided_slice %218 {offsets = [0, 32], sizes = [4, 32], strides = [1, 1]} : vector<4x96xf32> to vector<4x32xf32>
    %276 = arith.addf %274, %275 : vector<4x32xf32>
    %cst_83 = arith.constant 5.000000e-01 : f32
    %277 = vector.broadcast %cst_83 : f32 to vector<4x32xf32>
    %278 = arith.mulf %277, %276 : vector<4x32xf32>
    %279 = math.tanh %278 : vector<4x32xf32>
    %cst_84 = arith.constant 1.000000e+00 : f32
    %280 = vector.broadcast %cst_84 : f32 to vector<4x32xf32>
    %281 = arith.addf %279, %280 : vector<4x32xf32>
    %cst_85 = arith.constant 5.000000e-01 : f32
    %282 = vector.broadcast %cst_85 : f32 to vector<4x32xf32>
    %283 = arith.mulf %282, %281 : vector<4x32xf32>
    %284 = vector.extract_strided_slice %263 {offsets = [0, 64], sizes = [4, 32], strides = [1, 1]} : vector<4x96xf32> to vector<4x32xf32>
    %285 = vector.extract_strided_slice %218 {offsets = [0, 64], sizes = [4, 32], strides = [1, 1]} : vector<4x96xf32> to vector<4x32xf32>
    %286 = arith.mulf %273, %285 : vector<4x32xf32>
    %287 = arith.addf %284, %286 : vector<4x32xf32>
    %288 = math.tanh %287 : vector<4x32xf32>
    %cst_86 = arith.constant 1.000000e+00 : f32
    %289 = vector.broadcast %cst_86 : f32 to vector<4x32xf32>
    %290 = arith.subf %289, %283 : vector<4x32xf32>
    %291 = arith.mulf %290, %288 : vector<4x32xf32>
    %292 = arith.mulf %283, %214 : vector<4x32xf32>
    %293 = arith.addf %291, %292 : vector<4x32xf32>
    %294 = arith.truncf %293 : vector<4x32xf32> to vector<4x32xbf16>
    %cst_87 = arith.constant dense<0.000000e+00> : vector<4x8xf32>
    %295 = tpu.matmul %294, %7, %cst_87 {dimension_numbers = #tpu.dot_dimension_numbers<[1], [0], [0], [1], [0, 0, 1, 1], [], []>} : vector<4x32xbf16>, vector<32x8xbf16>, vector<4x8xf32> -> vector<4x8xf32>
    %296 = vector.broadcast %11 : vector<1x8xf32> to vector<4x8xf32>
    %297 = arith.addf %295, %296 : vector<4x8xf32>
    %298 = vector.broadcast %33 : vector<4x1xf32> to vector<4x8xf32>
    %299 = arith.mulf %297, %298 : vector<4x8xf32>
    %300 = vector.broadcast %32 : vector<4x1xf32> to vector<4x8xf32>
    %301 = arith.addf %299, %300 : vector<4x8xf32>
    %302 = tpu.concatenate %262, %301 in 1 : vector<4x8xf32>, vector<4x8xf32> -> vector<4x16xf32>
    %c0_88 = arith.constant 0 : index
    %c0_89 = arith.constant 0 : index
    %c0_90 = arith.constant 0 : index
    %303 = vector.load %arg11[%c0_88, %c0_89, %c0_90] : memref<1x4x16xf32, #tpu.memory_space<vmem>>, vector<1x4x16xf32>
    %304 = vector.shape_cast %303 : vector<1x4x16xf32> to vector<4x16xf32>
    %305 = vector.shape_cast %302 : vector<4x16xf32> to vector<1x4x16xf32>
    tpu.vector_store %arg11[%c0_88, %c0_89, %c0_90], %305 {strides = array<i32>} : memref<1x4x16xf32, #tpu.memory_space<vmem>>, vector<1x4x16xf32>,
    return
  }
  func.func @transform_0(%arg0: i32) -> (i32, i32, i32) {
    %c0_i32 = arith.constant 0 : i32
    %c0_i32_0 = arith.constant 0 : i32
    %c0_i32_1 = arith.constant 0 : i32
    return %arg0, %c0_i32, %c0_i32_0 : i32, i32, i32
  }
  func.func @transform_1(%arg0: i32) -> (i32, i32) {
    %c0_i32 = arith.constant 0 : i32
    %c0_i32_0 = arith.constant 0 : i32
    %c0_i32_1 = arith.constant 0 : i32
    return %c0_i32, %c0_i32_0 : i32, i32
  }
  func.func @transform_2(%arg0: i32) -> (i32, i32) {
    %c0_i32 = arith.constant 0 : i32
    %c0_i32_0 = arith.constant 0 : i32
    %c0_i32_1 = arith.constant 0 : i32
    return %c0_i32, %c0_i32_0 : i32, i32
  }
  func.func @transform_3(%arg0: i32) -> (i32, i32) {
    %c0_i32 = arith.constant 0 : i32
    %c0_i32_0 = arith.constant 0 : i32
    %c0_i32_1 = arith.constant 0 : i32
    return %c0_i32, %c0_i32_0 : i32, i32
  }
  func.func @transform_4(%arg0: i32) -> (i32, i32) {
    %c0_i32 = arith.constant 0 : i32
    %c0_i32_0 = arith.constant 0 : i32
    %c0_i32_1 = arith.constant 0 : i32
    return %c0_i32, %c0_i32_0 : i32, i32
  }
  func.func @transform_5(%arg0: i32) -> (i32, i32) {
    %c0_i32 = arith.constant 0 : i32
    %c0_i32_0 = arith.constant 0 : i32
    %c0_i32_1 = arith.constant 0 : i32
    return %c0_i32, %c0_i32_0 : i32, i32
  }
  func.func @transform_6(%arg0: i32) -> (i32, i32) {
    %c0_i32 = arith.constant 0 : i32
    %c0_i32_0 = arith.constant 0 : i32
    %c0_i32_1 = arith.constant 0 : i32
    return %c0_i32, %c0_i32_0 : i32, i32
  }
  func.func @transform_7(%arg0: i32) -> (i32, i32) {
    %c0_i32 = arith.constant 0 : i32
    %c0_i32_0 = arith.constant 0 : i32
    %c0_i32_1 = arith.constant 0 : i32
    return %c0_i32, %c0_i32_0 : i32, i32
  }
  func.func @transform_8(%arg0: i32) -> (i32, i32) {
    %c0_i32 = arith.constant 0 : i32
    %c0_i32_0 = arith.constant 0 : i32
    %c0_i32_1 = arith.constant 0 : i32
    return %c0_i32, %c0_i32_0 : i32, i32
  }
  func.func @transform_9(%arg0: i32) -> (i32, i32) {
    %c0_i32 = arith.constant 0 : i32
    %c0_i32_0 = arith.constant 0 : i32
    %c0_i32_1 = arith.constant 0 : i32
    return %c0_i32, %c0_i32_0 : i32, i32
  }
  func.func @transform_10(%arg0: i32) -> (i32, i32, i32) {
    %c0_i32 = arith.constant 0 : i32
    %c0_i32_0 = arith.constant 0 : i32
    %c0_i32_1 = arith.constant 0 : i32
    return %arg0, %c0_i32, %c0_i32_0 : i32, i32, i32
  }
}

</mosaic_0001>

<bundles_post_ra>
// kernel: _lambda_.1
= control target key start
LH: loop header
LB: loop body
LE: loop exit
PB: predicated region body
PF: predicated region fallthrough
CT: control target
= control target key end

     0   :  { %15 = vsyncpa [#allocation3], 0  ;;  %s2112_s0 = inlined_call_operand.vmem [shape: f32[2,4,32], index: 0, kind: input, shape index: {}]   ;;  %s2113_s1 = inlined_call_operand.vmem [shape: f32[8,32], index: 1, kind: input, shape index: {}]   ;;  %s2114_s2 = inlined_call_operand.vmem [shape: f32[1,32], index: 2, kind: input, shape index: {}]   ;;  %s2115_s3 = inlined_call_operand.vmem [shape: f32[32,96], index: 3, kind: input, shape index: {}]   ;;  %s2116_s4 = inlined_call_operand.vmem [shape: f32[32,96], index: 4, kind: input, shape index: {}]   ;;  %s2117_s5 = inlined_call_operand.vmem [shape: f32[1,96], index: 5, kind: input, shape index: {}]   ;;  %s2118_s6 = inlined_call_operand.vmem [shape: f32[1,96], index: 6, kind: input, shape index: {}]   ;;  %s2119_s7 = inlined_call_operand.vmem [shape: f32[8,32], index: 7, kind: input, shape index: {}]   ;;  %s2120_s8 = inlined_call_operand.vmem [shape: f32[32,8], index: 8, kind: input, shape index: {}]   ;;  %s2121_s9 = inlined_call_operand.vmem [shape: f32[1,8], index: 9, kind: input, shape index: {}]   ;;  %s2122_s10 = inlined_call_operand.hbm [shape: f32[2,4,16], index: 10, kind: output, shape index: {}]  }
   0x1   :  { %17 = vsyncpa [#allocation3 + $0x1], 0  ;;  %s1794_s13 = smov 0   ;;  %s1796_s14 = smov 0  }
   0x2   :  { %s1798_s15 = smov 0   ;;  %s1800_s16 = smov 0  }
   0x3 LB: > { %s1815_s17 = sadd.s32 4294967295, %s1727_s16   ;;  %s1396_s18 = sadd.s32 4294967294, %s1727_s16   ;;  %s1727_s16 = sphi %s1800_s16, %s2128_s16   ;;  %s1723_s15 = sphi %s1798_s15, %s2127_s15   ;;  %s1719_s14 = sphi %s1796_s14, %s2126_s14   ;;  %s1715_s13 = sphi %s1794_s13, %s2125_s13  }
   0x4   : > { %s1819_s19 = sadd.s32 1, %s1727_s16   ;;  %s245_s20 = sadd.s32 1, %s1723_s15 }
   0x5   : > { %s242_s21 = ssub.s32 %s1727_s16, %s1819_s19  ;;  %p255_p0 = scmp.ne.s32.totalorder %s1723_s15, %s1719_s14 }
   0x6   : > { %p243_p1 = scmp.eq.s32.totalorder %s242_s21, 0  ;;  %p256_p2 = scmp.eq.s32.totalorder %s1815_s17, 1 }
   0x7   : > { %p261_p3 = scmp.ne.s32.totalorder %s1719_s14, %s1715_s13  ;;  %p262_p4 = scmp.eq.s32.totalorder %s1396_s18, 1 }
   0x8   : > { %s1830_s22 = scalar_select %p243_p1, %s1723_s15, %s245_s20  }
   0x9   : > { %p1832_p5 = por %p256_p2, %p255_p0  ;;  %p1836_p6 = por %p262_p4, %p261_p3 }
   0xa   : > { %p1399_p7 = scmp.ge.s32.totalorder %s1727_s16, 1  ;;  %p314_p8 = scmp.lt.s32.totalorder %s1727_s16, 3 }
   0xc   : > { %p315_p9 = pnand %p1399_p7, %p314_p8 }
   0xd   : > { %p351_p10 = scmp.lt.s32.totalorder (!%p315_p9), %s1815_s17, 1  ;;  %vm381_vm0 = vcmask (!%p315_p9), 257024   ;;  %v356_v7 = vld [vmem:[%s2113_s1] sm:$0xff] (!%p315_p9)  ;;  %vm414_vm1 = vcmask (!%p315_p9), 1043456   ;;  %v1729_v8 = vmov (!%p315_p9), 0.0   ;;  %vm1730_vm2 = vmmov (!%p315_p9), 0  }
   0xe   : > { %318 = sbr.rel (%p315_p9) target bundleno = 4318 (0x10de), region = 60  ;;  %1469 = vmatprep.subr.bf16.mxu0 (!%p315_p9), %v1729_v8  ;;  %v357_v9 = vpack.c.bf16 (!%p315_p9), %v356_v7, %v356_v7  ;;  %1471 = vmatprep.mubr.msk.bf16.mxu0 (!%p315_p9), %vm1730_vm2, %v1729_v8  ;;  %vm410_vm5 = vcmask (!%p315_p9), 64512   ;;  %s1731_s12 = smov (!%p315_p9), 104   ;;  %v358_v22 = vld [vmem:[%s2115_s3] sm:$0xff] (!%p315_p9)  ;;  %v359_v23 = vld [vmem:[%s2115_s3 + $0x8] sm:$0xff] (!%p315_p9)  ;;  %v360_v25 = vld [vmem:[%s2115_s3 + $0x10] sm:$0xff] (!%p315_p9) }
   0xf   : > { %1475 = vmatprep.subr.bf16.mxu1 (!%p315_p9), %v1729_v8  ;;  %1479 = vmatprep.mubr.msk.bf16.mxu1 (!%p315_p9), %vm1730_vm2, %v1729_v8  ;;  %s1732_s18 = smov (!%p315_p9), 120   ;;  %s1733_s20 = smov (!%p315_p9), 112   ;;  %v1873_v24 = vpack.c.bf16 (!%p315_p9), %v359_v23, %v358_v22  ;;  %v361_v26 = vld [vmem:[%s2115_s3 + $0x18] sm:$0xff] (!%p315_p9)  ;;  %v364_v30 = vld [vmem:[%s2116_s4] sm:$0xff] (!%p315_p9)  ;;  %v365_v31 = vld [vmem:[%s2116_s4 + $0x8] sm:$0xff] (!%p315_p9)  ;;  %v1734_v37 = vmov (!%p315_p9), 0  }
  0x10   : > { %v416_v10 = vsel (!%p315_p9), %vm414_vm1, %v357_v9, 0  ;;  %v1883_v27 = vpack.c.bf16 (!%p315_p9), %v361_v26, %v360_v25  ;;  %v1901_v32 = vpack.c.bf16 (!%p315_p9), %v365_v31, %v364_v30  ;;  %v366_v33 = vld [vmem:[%s2116_s4 + $0x10] sm:$0xff] (!%p315_p9)  ;;  %v367_v34 = vld [vmem:[%s2116_s4 + $0x18] sm:$0xff] (!%p315_p9)  ;;  %v1402_v38 = vld [vmem:[%s2114_s2] ss:$0 sm:$0xff] (!%p315_p9)  ;;  %vm466_vm6 = vcmask (!%p315_p9), 261120  }
  0x11   : > { %1470 = vmatpush3.bf16.msra.mxu0 (!%p315_p9), %v416_v10  ;;  %1476 = vmatpush3.bf16.msra.mxu1 (!%p315_p9), %v1873_v24  ;;  %v1911_v36 = vpack.c.bf16 (!%p315_p9), %v367_v34, %v366_v33  ;;  %s348_s28 = sand.u32 (!%p315_p9), 1, %s1719_s14   ;;  %s1422_s30 = sshll.u32 (!%p315_p9), %s1815_s17, 6  ;;  %vm1321_vm7 = vcmask (!%p315_p9), 125952  }
  0x12   : > { %1483 = vmatprep.subr.bf16.mxu0 (!%p315_p9), %v1729_v8  ;;  %1477 = vmatprep.subr.bf16.mxu1 (!%p315_p9), %v1729_v8  ;;  %s2069_s21 = scalar_lea.hbm (!%p315_p9), %s2122_s10, %s1422_s30  ;;  %s1738_s27 = smov (!%p315_p9), [#allocation2]  }
  0x15   : > { %s352_s25 = scalar_select %p351_p10, %s1815_s17, 1  ;;  %1478 = vmatpush3.bf16.msra.mxu1 %v1883_v27 }
  0x16   : > { %1489 = vmatprep.subr.bf16.mxu1 %v1729_v8  ;;  %s1324_s17 = scalar_lea.sflag [#allocation3], %s348_s28 }
  0x17   : > { %s1401_s26 = sshll.u32 %s352_s25, 2  ;;  %s1736_s25 = smov 96  }
  0x18   : > { %s354_s29 = scalar_lea.vmem %s2112_s0, %s1401_s26 }
  0x19   : > { %v380_v0 = vld [vmem:[%s354_s29] sm:$0xf]  ;;  %s1400_s29 = sshll.u32 %s348_s28, 2 }
  0x1a   : > { %v382_v1 = vsel %vm381_vm0, %v380_v0, 0.0  ;;  %s350_s11 = scalar_lea.vmem [#allocation2], %s1400_s29 }
  0x1b   : > { %383 = vadd.xlane.f32.xlu0 %v382_v1 }
  0xa8   : > { %v384_v2 = vpop.xlane.xlu0 %383 }
  0xa9   : > { %v1847_v3 = vmul.f32 0.03125, %v384_v2 }
  0xab   : > { %v386_v4 = vsub.f32 %v380_v0, %v1847_v3 }
  0xad   : > { %v387_v5 = vmul.f32 %v386_v4, %v386_v4 }
  0xaf   : > { %v388_v6 = vsel %vm381_vm0, %v387_v5, 0.0 }
  0xb0   : > { %389 = vadd.xlane.f32.xlu0 %v388_v6 }
 0x13d   : > { %v390_v11 = vpop.xlane.xlu0 %389 }
 0x13e   : > { %v391_v12 = vmul.f32 0.03125, %v390_v11 }
 0x140   : > { %v392_v13 = vadd.f32 1e-05, %v391_v12 }
 0x142   : > { %1637 = vrsqrt.f32 %v392_v13  ;;  %vm395_vm3 = vcmp.eq.f32.partialorder %v392_v13, inf  ;;  %v398_v16 = vand.u32 2147483648, %v392_v13  ;;  %vm397_vm4 = vcmp.eq.f32.partialorder %v392_v13, 0.0 }
 0x14c   : > { %v1638_v14 = vpop.eup %1637 }
 0x14d   : > { %v394_v15 = vmul.f32 %v1638_v14, %v392_v13 }
 0x14f   : > { %v396_v17 = vsel %vm395_vm3, %v392_v13, %v394_v15  ;;  %v1965_v15 = vld [vmem:[%s2117_s5] ss:$0 sm:$0xff] }
 0x150   : > { %v1860_v18 = vsel %vm397_vm4, %v398_v16, %v396_v17 }
 0x151   : > { %1639 = vrcp.f32 %v1860_v18 }
 0x15b   : > { %v1640_v19 = vpop.eup %1639 }
 0x15c   : > { %v402_v20 = vmul.f32 %v1640_v19, %v386_v4  ;;  %v1951_v4 = vld [vmem:[%s2118_s6] ss:$0 sm:$0xff] }
 0x15e   : > { %v403_v21 = vpack.c.bf16 %v402_v20, %v402_v20 }
 0x160   : > { %691 = vrot.lane.b32.xlu0 %v403_v21, %s1731_s12  ;;  %511 = vrot.lane.b32.xlu1 %v403_v21, %s1732_s18  ;;  %s1735_s18 = smov 64   ;;  %s1337_s12 = sshll.u32 %s350_s11, 4  ;;  %s2071_s12 = int_to_ptr.vmem [resolvable:$true] %s1337_s12 }
 0x161   : > { %1472 = vmatmul.mubr.msk.bf16.vlgmr.msra.gmra.mrb[0].mxu0 %vm410_vm5, %v403_v21  ;;  %s1665_s26 = scalar_lea.vmem %s2071_s12, 64 }
 0x162   : > { %1484 = vmatpush3.bf16.msra.mxu0 %v416_v10  ;;  %1485 = vmatprep.mubr.msk.bf16.mxu0 %vm1730_vm2, %v1729_v8  ;;  %p1666_p11 = scmp.ne.s32.totalorder %s2071_s12, %s1665_s26 }
 0x163   : > { %1497 = vmatprep.subr.bf16.mxu0 %v1729_v8 }
 0x164   : > { %601 = vrot.lane.b32.xlu1 %v403_v21, %s1733_s20  ;;  %p1667_p12 = pnand %p1666_p11, %p1832_p5 }
 0x166   : > { %p1668_p13 = pneg %p1667_p12 }
 0x1d2   : > { %v512_v28 = vpop.permute.xlu1 %511  ;;  %v692_v35 = vpop.permute.xlu0 %691 }
 0x1d3   : > { %1486 = vmatmul.mubr.msk.bf16.vlgmr.msra.gmra.mrb[4].mxu0 %vm410_vm5, %v512_v28 }
 0x1d4   : > { %1498 = vmatpush3.bf16.msra.mxu0 %v416_v10  ;;  %1499 = vmatprep.mubr.msk.bf16.mxu0 %vm1730_vm2, %v1729_v8 }
 0x1d5   : > { %1511 = vmatprep.subr.bf16.mxu0 %v1729_v8 }
 0x1d6   : > { %v602_v29 = vpop.permute.xlu1 %601 }
 0x1db   : > { %1500 = vmatmul.mubr.msk.bf16.vlgmr.msra.gmra.mrb[8].mxu0 %vm410_vm5, %v602_v29 }
 0x1dc   : > { %1512 = vmatpush3.bf16.msra.mxu0 %v416_v10  ;;  %1513 = vmatprep.mubr.msk.bf16.mxu0 %vm1730_vm2, %v1729_v8 }
 0x1dd   : > { %1525 = vmatprep.subr.bf16.mxu0 %v1729_v8 }
 0x1e3   : > { %1514 = vmatmul.mubr.msk.bf16.vlgmr.msra.gmra.mrb[12].mxu0 %vm410_vm5, %v692_v35 }
 0x1e4   : > { %1526 = vmatpush3.bf16.msra.mxu0 %v1901_v32  ;;  %1529 = vmatprep.mubr.msk.bf16.mxu0 %vm1730_vm2, %v1729_v8 }
 0x1e5   : > { %1527 = vmatprep.subr.bf16.mxu0 %v1729_v8 }
 0x1e8   : > { %1528 = vmatpush3.bf16.msra.mxu0 %v1911_v36 }
 0x1e9   : > { %1541 = vmatprep.subr.bf16.mxu0 %v1729_v8 }
 0x1eb   : > { %1530 = vmatmul.mubr.bf16.vlgmr.msra.gmra.mrb[16].mxu0 %v1734_v37 }
 0x1ec   : > { %1542 = vmatpush3.bf16.msra.mxu0 %v1901_v32  ;;  %1545 = vmatprep.mubr.msk.bf16.mxu0 %vm1730_vm2, %v1729_v8 }
 0x1ed   : > { %1543 = vmatprep.subr.bf16.mxu0 %v1729_v8 }
 0x1f0   : > { %1544 = vmatpush3.bf16.msra.mxu0 %v1911_v36 }
 0x1f1   : > { %1557 = vmatprep.subr.bf16.mxu0 %v1729_v8 }
 0x234   : > { %v452_v39 = vpop.f32.mrb[0].mxu0 }
 0x235   : > { %v453_v40 = vadd.f32 %v1402_v38, %v452_v39  ;;  %v1473_v41 = vpop.f32.mrb[1].mxu0 }
 0x236   : > { %v455_v42 = vpop.f32.mrb[2].mxu0 }
 0x237   : > { %v458_v43 = vmax.f32 %v453_v40, 0.0  ;;  %v1474_v44 = vpop.f32.mrb[3].mxu0 }
 0x239   : > { %v459_v45 = vpack.c.bf16 %v458_v43, %v458_v43 }
 0x23b   : > { %1480 = vmatmul.mubr.msk.bf16.vlgmr.msra.gmra.mrb[0].mxu1 %vm466_vm6, %v459_v45 }
 0x23c   : > { %1490 = vmatpush3.bf16.msra.mxu1 %v1873_v24  ;;  %1493 = vmatprep.mubr.msk.bf16.mxu1 %vm1730_vm2, %v1729_v8 }
 0x23d   : > { %1491 = vmatprep.subr.bf16.mxu1 %v1729_v8 }
 0x240   : > { %1492 = vmatpush3.bf16.msra.mxu1 %v1883_v27 }
 0x241   : > { %1503 = vmatprep.subr.bf16.mxu1 %v1729_v8 }
 0x2a6   : > { %v550_v46 = vpop.f32.mrb[4].mxu0 }
 0x2a7   : > { %v551_v47 = vadd.f32 %v1402_v38, %v550_v46  ;;  %v1487_v48 = vpop.f32.mrb[5].mxu0 }
 0x2a8   : > { %v553_v49 = vpop.f32.mrb[6].mxu0 }
 0x2a9   : > { %v556_v50 = vmax.f32 %v551_v47, 0.0  ;;  %v1488_v51 = vpop.f32.mrb[7].mxu0 }
 0x2ab   : > { %v557_v52 = vpack.c.bf16 %v556_v50, %v556_v50 }
 0x2ad   : > { %1494 = vmatmul.mubr.msk.bf16.vlgmr.msra.gmra.mrb[4].mxu1 %vm466_vm6, %v557_v52 }
 0x2ae   : > { %v640_v53 = vpop.f32.mrb[8].mxu0  ;;  %1504 = vmatpush3.bf16.msra.mxu1 %v1873_v24  ;;  %1507 = vmatprep.mubr.msk.bf16.mxu1 %vm1730_vm2, %v1729_v8 }
 0x2af   : > { %v641_v54 = vadd.f32 %v1402_v38, %v640_v53  ;;  %v1501_v55 = vpop.f32.mrb[9].mxu0  ;;  %1505 = vmatprep.subr.bf16.mxu1 %v1729_v8 }
 0x2b0   : > { %v643_v56 = vpop.f32.mrb[10].mxu0 }
 0x2b1   : > { %v646_v57 = vmax.f32 %v641_v54, 0.0  ;;  %v1502_v58 = vpop.f32.mrb[11].mxu0 }
 0x2b2   : > { %1506 = vmatpush3.bf16.msra.mxu1 %v1883_v27 }
 0x2b3   : > { %v647_v59 = vpack.c.bf16 %v646_v57, %v646_v57  ;;  %1517 = vmatprep.subr.bf16.mxu1 %v1729_v8 }
 0x2b5   : > { %1508 = vmatmul.mubr.msk.bf16.vlgmr.msra.gmra.mrb[8].mxu1 %vm466_vm6, %v647_v59 }
 0x2b6   : > { %v730_v60 = vpop.f32.mrb[12].mxu0  ;;  %1518 = vmatpush3.bf16.msra.mxu1 %v1873_v24  ;;  %1521 = vmatprep.mubr.msk.bf16.mxu1 %vm1730_vm2, %v1729_v8 }
 0x2b7   : > { %v731_v61 = vadd.f32 %v1402_v38, %v730_v60  ;;  %v1515_v62 = vpop.f32.mrb[13].mxu0  ;;  %1519 = vmatprep.subr.bf16.mxu1 %v1729_v8 }
 0x2b8   : > { %v733_v63 = vpop.f32.mrb[14].mxu0 }
 0x2b9   : > { %v736_v0 = vmax.f32 %v731_v61, 0.0  ;;  %v1516_v1 = vpop.f32.mrb[15].mxu0 }
 0x2ba   : > { %1520 = vmatpush3.bf16.msra.mxu1 %v1883_v27 }
 0x2bb   : > { %v737_v2 = vpack.c.bf16 %v736_v0, %v736_v0  ;;  %1533 = vmatprep.subr.bf16.mxu1 %v1729_v8 }
 0x2bd   : > { %1522 = vmatmul.mubr.msk.bf16.vlgmr.msra.gmra.mrb[12].mxu1 %vm466_vm6, %v737_v2 }
 0x2be   : > { %v824_v5 = vpop.f32.mrb[16].mxu0  ;;  %1534 = vmatpush3.bf16.msra.mxu1 %v1901_v32  ;;  %1537 = vmatprep.mubr.msk.bf16.mxu1 %vm1730_vm2, %v1729_v8 }
 0x2bf   : > { %v825_v6 = vadd.f32 %v1951_v4, %v824_v5  ;;  %v1531_v7 = vpop.f32.mrb[17].mxu0  ;;  %1535 = vmatprep.subr.bf16.mxu1 %v1729_v8 }
 0x2c0   : > { %v827_v9 = vpop.f32.mrb[18].mxu0 }
 0x2c1   : > { %836 = vrot.lane.b32.xlu1 %v825_v6, %s1735_s18  ;;  %v1532_v10 = vpop.f32.mrb[19].mxu0 }
 0x2c2   : > { %1536 = vmatpush3.bf16.msra.mxu1 %v1911_v36 }
 0x2c3   : > { %1549 = vmatprep.subr.bf16.mxu1 %v1729_v8 }
 0x30e   : > { %v504_v11 = vpop.f32.mrb[0].mxu1 }
 0x30f   : > { %v1481_v12 = vpop.f32.mrb[1].mxu1  ;;  %v505_v16 = vadd.f32 %v1965_v15, %v504_v11 }
 0x310   : > { %v507_v13 = vpop.f32.mrb[2].mxu1 }
 0x311   : > { %v1482_v14 = vpop.f32.mrb[3].mxu1  ;;  %v830_v17 = vadd.f32 %v825_v6, %v505_v16 }
 0x313   : > { %v831_v19 = vmul.f32 0.5, %v830_v17 }
 0x315   : > { %1641 = vtanh.f32 %v831_v19 }
 0x31f   : > { %v1642_v20 = vpop.eup %1641 }
 0x320   : > { %v833_v21 = vadd.f32 1.0, %v1642_v20 }
 0x322   : > { %v834_v22 = vmul.f32 0.5, %v833_v21 }
 0x324   : > { %v846_v44 = vsub.f32 1.0, %v834_v22  ;;  %v852_v46 = vmul.f32 0.0, %v834_v22 }
 0x333   : > { %v837_v23 = vpop.permute.xlu1 %836 }
 0x334   : > { %v839_v25 = vmul.f32 %v837_v23, %v834_v22 }
 0x336   : > { %841 = vrot.lane.b32.xlu1 %v839_v25, %s1735_s18 }
 0x380   : > { %v595_v26 = vpop.f32.mrb[4].mxu1 }
 0x381   : > { %v1495_v28 = vpop.f32.mrb[5].mxu1  ;;  %v596_v56 = vadd.f32 %v1965_v15, %v595_v26 }
 0x382   : > { %v598_v29 = vpop.f32.mrb[6].mxu1 }
 0x383   : > { %v1496_v30 = vpop.f32.mrb[7].mxu1 }
 0x388   : > { %v1969_v31 = vpop.f32.mrb[8].mxu1 }
 0x389   : > { %v1509_v33 = vpop.f32.mrb[9].mxu1 }
 0x38a   : > { %v688_v34 = vpop.f32.mrb[10].mxu1 }
 0x38b   : > { %v1510_v35 = vpop.f32.mrb[11].mxu1 }
 0x390   : > { %v1971_v37 = vpop.f32.mrb[12].mxu1 }
 0x391   : > { %v1523_v38 = vpop.f32.mrb[13].mxu1 }
 0x392   : > { %v778_v39 = vpop.f32.mrb[14].mxu1 }
 0x393   : > { %v1524_v40 = vpop.f32.mrb[15].mxu1 }
 0x3a8   : > { %v842_v41 = vpop.permute.xlu1 %841 }
 0x3a9   : > { %v844_v42 = vadd.f32 %v842_v41, %v505_v16 }
 0x3ab   : > { %1643 = vtanh.f32 %v844_v42 }
 0x3b5   : > { %v1644_v43 = vpop.eup %1643 }
 0x3b6   : > { %848 = vrot.lane.b32.xlu1 %v1644_v43, %s1736_s25 }
 0x428   : > { %v849_v45 = vpop.permute.xlu1 %848 }
 0x429   : > { %v851_v47 = vmul.f32 %v849_v45, %v846_v44 }
 0x42b   : > { %v853_v48 = vadd.f32 %v852_v46, %v851_v47 }
 0x42d   : > { %v854_v49 = vpack.c.bf16 %v853_v48, %v853_v48 }
 0x42f   : > { %856 = vrot.lane.b32.xlu1 %v854_v49, %s1736_s25 }
 0x4a1   : > { %v857_v50 = vpop.permute.xlu1 %856 }
 0x4a2   : > { %1538 = vmatmul.mubr.msk.bf16.vlgmr.msra.gmra.mrb[16].mxu1 %vm466_vm6, %v857_v50 }
 0x4a3   : > { %1550 = vmatpush3.bf16.msra.mxu1 %v1901_v32  ;;  %1553 = vmatprep.mubr.msk.bf16.mxu1 %vm1730_vm2, %v1729_v8 }
 0x4a4   : > { %1551 = vmatprep.subr.bf16.mxu1 %v1729_v8 }
 0x4a7   : > { %1552 = vmatpush3.bf16.msra.mxu1 %v1911_v36 }
 0x4a8   : > { %1565 = vmatprep.subr.bf16.mxu1 %v1729_v8 }
 0x575   : > { %v895_v51 = vpop.f32.mrb[16].mxu1 }
 0x576   : > { %v896_v52 = vadd.f32 %v1951_v4, %v895_v51  ;;  %v1539_v53 = vpop.f32.mrb[17].mxu1 }
 0x577   : > { %v898_v54 = vpop.f32.mrb[18].mxu1 }
 0x578   : > { %907 = vrot.lane.b32.xlu1 %v896_v52, %s1735_s18  ;;  %v1540_v55 = vpop.f32.mrb[19].mxu1  ;;  %v901_v57 = vadd.f32 %v896_v52, %v596_v56 }
 0x57a   : > { %v902_v58 = vmul.f32 0.5, %v901_v57 }
 0x57c   : > { %1645 = vtanh.f32 %v902_v58 }
 0x586   : > { %v1646_v59 = vpop.eup %1645 }
 0x587   : > { %v904_v60 = vadd.f32 1.0, %v1646_v59 }
 0x589   : > { %v905_v61 = vmul.f32 0.5, %v904_v60 }
 0x58b   : > { %v917_v5 = vsub.f32 1.0, %v905_v61  ;;  %v923_v7 = vmul.f32 %v905_v61, %v853_v48 }
 0x5ea   : > { %v908_v62 = vpop.permute.xlu1 %907 }
 0x5eb   : > { %v910_v63 = vmul.f32 %v908_v62, %v905_v61 }
 0x5ed   : > { %912 = vrot.lane.b32.xlu1 %v910_v63, %s1735_s18 }
 0x65f   : > { %v913_v0 = vpop.permute.xlu1 %912 }
 0x660   : > { %v915_v1 = vadd.f32 %v913_v0, %v596_v56 }
 0x662   : > { %1647 = vtanh.f32 %v915_v1 }
 0x66c   : > { %v1648_v2 = vpop.eup %1647 }
 0x66d   : > { %919 = vrot.lane.b32.xlu0 %v1648_v2, %s1736_s25 }
 0x6df   : > { %v920_v6 = vpop.permute.xlu0 %919 }
 0x6e0   : > { %v922_v9 = vmul.f32 %v920_v6, %v917_v5 }
 0x6e2   : > { %v924_v10 = vadd.f32 %v923_v7, %v922_v9 }
 0x6e4   : > { %v925_v11 = vpack.c.bf16 %v924_v10, %v924_v10 }
 0x6e6   : > { %927 = vrot.lane.b32.xlu1 %v925_v11, %s1736_s25 }
 0x758   : > { %v928_v12 = vpop.permute.xlu1 %927 }
 0x759   : > { %1546 = vmatmul.mubr.msk.bf16.vlgmr.msra.gmra.mrb[20].mxu0 %vm466_vm6, %v928_v12 }
 0x75a   : > { %1558 = vmatpush3.bf16.msra.mxu0 %v1901_v32  ;;  %1561 = vmatprep.mubr.msk.bf16.mxu0 %vm1730_vm2, %v1729_v8  ;;  %v686_v32 = vadd.f32 %v1965_v15, %v1969_v31 }
 0x75b   : > { %1559 = vmatprep.subr.bf16.mxu0 %v1729_v8 }
 0x75e   : > { %1560 = vmatpush3.bf16.msra.mxu0 %v1911_v36 }
 0x75f   : > { %1573 = vmatprep.subr.bf16.mxu0 %v1729_v8 }
 0x82c   : > { %v966_v13 = vpop.f32.mrb[20].mxu0 }
 0x82d   : > { %v967_v14 = vadd.f32 %v1951_v4, %v966_v13  ;;  %v1547_v16 = vpop.f32.mrb[21].mxu0 }
 0x82e   : > { %v969_v17 = vpop.f32.mrb[22].mxu0 }
 0x82f   : > { %978 = vrot.lane.b32.xlu0 %v967_v14, %s1735_s18  ;;  %v1548_v19 = vpop.f32.mrb[23].mxu0  ;;  %v972_v20 = vadd.f32 %v967_v14, %v686_v32 }
 0x831   : > { %v973_v21 = vmul.f32 0.5, %v972_v20 }
 0x833   : > { %1649 = vtanh.f32 %v973_v21 }
 0x83d   : > { %v1650_v22 = vpop.eup %1649 }
 0x83e   : > { %v975_v23 = vadd.f32 1.0, %v1650_v22 }
 0x840   : > { %v976_v25 = vmul.f32 0.5, %v975_v23 }
 0x842   : > { %v988_v33 = vsub.f32 1.0, %v976_v25  ;;  %v994_v35 = vmul.f32 %v976_v25, %v924_v10 }
 0x8a1   : > { %v979_v36 = vpop.permute.xlu0 %978 }
 0x8a2   : > { %v981_v26 = vmul.f32 %v979_v36, %v976_v25 }
 0x8a4   : > { %983 = vrot.lane.b32.xlu1 %v981_v26, %s1735_s18 }
 0x916   : > { %v984_v28 = vpop.permute.xlu1 %983 }
 0x917   : > { %v986_v29 = vadd.f32 %v984_v28, %v686_v32 }
 0x919   : > { %1651 = vtanh.f32 %v986_v29 }
 0x923   : > { %v1652_v30 = vpop.eup %1651 }
 0x924   : > { %990 = vrot.lane.b32.xlu0 %v1652_v30, %s1736_s25 }
 0x996   : > { %v991_v34 = vpop.permute.xlu0 %990 }
 0x997   : > { %v993_v31 = vmul.f32 %v991_v34, %v988_v33  ;;  %v370_v33 = vld [vmem:[%s2120_s8] sm:$0xff]  ;;  %v371_v34 = vld [vmem:[%s2120_s8 + $0x8] sm:$0xff] }
 0x999   : > { %v995_v38 = vadd.f32 %v994_v35, %v993_v31  ;;  %v372_v35 = vld [vmem:[%s2120_s8 + $0x10] sm:$0xff]  ;;  %v374_v31 = vpack.c.bf16 %v371_v34, %v370_v33 }
 0x99b   : > { %v996_v39 = vpack.c.bf16 %v995_v38, %v995_v38 }
 0x99d   : > { %998 = vrot.lane.b32.xlu1 %v996_v39, %s1736_s25 }
 0xa0f   : > { %v999_v40 = vpop.permute.xlu1 %998 }
 0xa10   : > { %1554 = vmatmul.mubr.msk.bf16.vlgmr.msra.gmra.mrb[20].mxu1 %vm466_vm6, %v999_v40 }
 0xa11   : > { %1566 = vmatpush3.bf16.msra.mxu1 %v1873_v24  ;;  %1569 = vmatprep.mubr.msk.bf16.mxu1 %vm1730_vm2, %v1729_v8  ;;  %v776_v24 = vadd.f32 %v1965_v15, %v1971_v37  ;;  %v1114_v37 = vld [vmem:[%s2119_s7] sm:$0xff] }
 0xa12   : > { %1567 = vmatprep.subr.bf16.mxu1 %v1729_v8  ;;  %v1115_v55 = vpack.c.bf16 %v1114_v37, %v1114_v37  ;;  %v1418_v37 = vld [vmem:[%s2121_s9] ss:$0 sm:$0xff] }
 0xa15   : > { %1568 = vmatpush3.bf16.msra.mxu1 %v1883_v27 }
 0xa16   : > { %1581 = vmatprep.subr.bf16.mxu1 %v1729_v8 }
 0xa18   : > { %1570 = vmatmul.mubr.msk.bf16.vlgmr.msra.gmra.mrb[24].mxu1 %vm466_vm6, %v1115_v55 }
 0xa19   : > { %1585 = vmatprep.mubr.msk.bf16.mxu1 %vm1730_vm2, %v1729_v8  ;;  %1582 = vmatpush3.bf16.msra.mxu1 %v374_v31 }
 0xa1a   : > { %1583 = vmatprep.subr.bf16.mxu1 %v1729_v8 }
 0xae3   : > { %v1037_v41 = vpop.f32.mrb[20].mxu1 }
 0xae4   : > { %v1038_v42 = vadd.f32 %v1951_v4, %v1037_v41  ;;  %v1555_v43 = vpop.f32.mrb[21].mxu1 }
 0xae5   : > { %v1040_v44 = vpop.f32.mrb[22].mxu1 }
 0xae6   : > { %1049 = vrot.lane.b32.xlu0 %v1038_v42, %s1735_s18  ;;  %v1556_v45 = vpop.f32.mrb[23].mxu1  ;;  %v1043_v46 = vadd.f32 %v1038_v42, %v776_v24 }
 0xae8   : > { %v1044_v47 = vmul.f32 0.5, %v1043_v46 }
 0xaea   : > { %1653 = vtanh.f32 %v1044_v47 }
 0xaeb   : > { %v1153_v63 = vpop.f32.mrb[24].mxu1 }
 0xaec   : > { %v1571_v0 = vpop.f32.mrb[25].mxu1  ;;  %v1154_v12 = vadd.f32 %v1965_v15, %v1153_v63 }
 0xaed   : > { %v1156_v1 = vpop.f32.mrb[26].mxu1 }
 0xaee   : > { %v1572_v2 = vpop.f32.mrb[27].mxu1 }
 0xaf4   : > { %v1654_v48 = vpop.eup %1653 }
 0xaf5   : > { %v1046_v49 = vadd.f32 1.0, %v1654_v48 }
 0xaf7   : > { %v1047_v50 = vmul.f32 0.5, %v1046_v49 }
 0xaf9   : > { %v1059_v56 = vsub.f32 1.0, %v1047_v50  ;;  %v1065_v58 = vmul.f32 %v1047_v50, %v995_v38  ;;  %v373_v38 = vld [vmem:[%s2120_s8 + $0x18] sm:$0xff] }
 0xafa   : > { %v375_v40 = vpack.c.bf16 %v373_v38, %v372_v35 }
 0xafc   : > { %1584 = vmatpush3.bf16.msra.mxu1 %v375_v40 }
 0xb58   : > { %v1050_v27 = vpop.permute.xlu0 %1049 }
 0xb59   : > { %v1052_v51 = vmul.f32 %v1050_v27, %v1047_v50 }
 0xb5b   : > { %1054 = vrot.lane.b32.xlu1 %v1052_v51, %s1735_s18 }
 0xbcd   : > { %v1055_v52 = vpop.permute.xlu1 %1054 }
 0xbce   : > { %v1057_v53 = vadd.f32 %v1055_v52, %v776_v24 }
 0xbd0   : > { %1655 = vtanh.f32 %v1057_v53 }
 0xbda   : > { %v1656_v54 = vpop.eup %1655 }
 0xbdb   : > { %1061 = vrot.lane.b32.xlu0 %v1656_v54, %s1736_s25 }
 0xc4d   : > { %v1062_v57 = vpop.permute.xlu0 %1061 }
 0xc4e   : > { %v1064_v59 = vmul.f32 %v1062_v57, %v1059_v56 }
 0xc50   : > { %v2021_v60 = vadd.f32 %v1065_v58, %v1064_v59 }
 0xc52   : > { %v1067_v61 = vpack.c.bf16 %v2021_v60, %v2021_v60  ;;  %v1262_v46 = vrot.slane %v2021_v60, 4 }
 0xc54   : > { %1069 = vrot.lane.b32.xlu1 %v1067_v61, %s1736_s25 }
 0xcc6   : > { %v1070_v62 = vpop.permute.xlu1 %1069 }
 0xcc7   : > { %1562 = vmatmul.mubr.msk.bf16.vlgmr.msra.gmra.mrb[24].mxu0 %vm466_vm6, %v1070_v62 }
 0xcc8   : > { %1577 = vmatprep.mubr.msk.bf16.mxu0 %vm1730_vm2, %v1729_v8  ;;  %1574 = vmatpush3.bf16.msra.mxu0 %v374_v31 }
 0xcc9   : > { %1575 = vmatprep.subr.bf16.mxu0 %v1729_v8 }
 0xccc   : > { %1576 = vmatpush3.bf16.msra.mxu0 %v375_v40 }
 0xd9a   : > { %v1108_v5 = vpop.f32.mrb[24].mxu0 }
 0xd9b   : > { %v1109_v6 = vadd.f32 %v1951_v4, %v1108_v5  ;;  %v1563_v7 = vpop.f32.mrb[25].mxu0 }
 0xd9c   : > { %v1111_v9 = vpop.f32.mrb[26].mxu0 }
 0xd9d   : > { %1165 = vrot.lane.b32.xlu1 %v1109_v6, %s1735_s18  ;;  %v1564_v10 = vpop.f32.mrb[27].mxu0  ;;  %v1238_v11 = vrot.slane %v1109_v6, 4  ;;  %v1159_v13 = vadd.f32 %v1154_v12, %v1109_v6 }
 0xd9f   : > { %1245 = vrot.lane.b32.xlu0 %v1238_v11, %s1735_s18  ;;  %v1240_v14 = vadd.f32 %v1238_v11, %v1154_v12  ;;  %v1160_v16 = vmul.f32 0.5, %v1159_v13 }
 0xda1   : > { %v1241_v17 = vmul.f32 0.5, %v1240_v14  ;;  %1657 = vtanh.f32 %v1160_v16 }
 0xda3   : > { %1659 = vtanh.f32 %v1241_v17 }
 0xdab   : > { %v1658_v19 = vpop.eup %1657 }
 0xdac   : > { %v1162_v20 = vadd.f32 1.0, %v1658_v19 }
 0xdad   : > { %v1660_v32 = vpop.eup %1659 }
 0xdae   : > { %v1243_v4 = vadd.f32 1.0, %v1660_v32  ;;  %v1163_v21 = vmul.f32 0.5, %v1162_v20 }
 0xdb0   : > { %v1244_v25 = vmul.f32 0.5, %v1243_v4  ;;  %v1175_v42 = vsub.f32 1.0, %v1163_v21  ;;  %v1181_v44 = vmul.f32 %v1163_v21, %v2021_v60 }
 0xdb2   : > { %v1255_v24 = vsub.f32 1.0, %v1244_v25  ;;  %v1264_v49 = vmul.f32 %v1262_v46, %v1244_v25 }
 0xe0f   : > { %v1166_v22 = vpop.permute.xlu1 %1165 }
 0xe10   : > { %v1168_v23 = vmul.f32 %v1166_v22, %v1163_v21 }
 0xe11   : > { %v1246_v36 = vpop.permute.xlu0 %1245 }
 0xe12   : > { %v1248_v26 = vmul.f32 %v1246_v36, %v1244_v25  ;;  %1170 = vrot.lane.b32.xlu1 %v1168_v23, %s1735_s18 }
 0xe14   : > { %1250 = vrot.lane.b32.xlu0 %v1248_v26, %s1735_s18 }
 0xe84   : > { %v1171_v15 = vpop.permute.xlu1 %1170 }
 0xe85   : > { %v1173_v28 = vadd.f32 %v1171_v15, %v1154_v12 }
 0xe86   : > { %v1251_v29 = vpop.permute.xlu0 %1250 }
 0xe87   : > { %1661 = vtanh.f32 %v1173_v28  ;;  %v1253_v30 = vadd.f32 %v1251_v29, %v1154_v12 }
 0xe89   : > { %1663 = vtanh.f32 %v1253_v30 }
 0xe91   : > { %v1662_v39 = vpop.eup %1661 }
 0xe92   : > { %1177 = vrot.lane.b32.xlu1 %v1662_v39, %s1736_s25 }
 0xe93   : > { %v1664_v41 = vpop.eup %1663 }
 0xe94   : > { %1257 = vrot.lane.b32.xlu0 %v1664_v41, %s1736_s25 }
 0xf04   : > { %v1178_v43 = vpop.permute.xlu1 %1177 }
 0xf05   : > { %v1180_v45 = vmul.f32 %v1178_v43, %v1175_v42 }
 0xf06   : > { %v1258_v47 = vpop.permute.xlu0 %1257 }
 0xf07   : > { %v1182_v48 = vadd.f32 %v1181_v44, %v1180_v45  ;;  %v1260_v50 = vmul.f32 %v1258_v47, %v1255_v24 }
 0xf09   : > { %v1183_v27 = vpack.c.bf16 %v1182_v48, %v1182_v48  ;;  %v1265_v51 = vadd.f32 %v1264_v49, %v1260_v50 }
 0xf0b   : > { %v1266_v52 = vpack.c.bf16 %v1265_v51, %v1265_v51  ;;  %1191 = vrot.lane.b32.xlu1 %v1183_v27, %s1736_s25 }
 0xf0d   : > { %v1268_v8 = vrot.slane %v1266_v52, 2 }
 0xf0f   : > { %1269 = vrot.lane.b32.xlu0 %v1268_v8, %s1736_s25  ;;  %s1737_s25 = smov 8  }
 0xf7d   : > { %v1192_v53 = vpop.permute.xlu1 %1191 }
 0xf7e   : > { %1578 = vmatmul.mubr.msk.bf16.vlgmr.msra.gmra.mrb[28].mxu0 %vm466_vm6, %v1192_v53 }
 0xf81   : > { %v1270_v54 = vpop.permute.xlu0 %1269 }
 0xf82   : > { %1586 = vmatmul.mubr.msk.bf16.vlgmr.msra.gmra.mrb[28].mxu1 %vm466_vm6, %v1270_v54 }
0x1051   : > { %v1230_v55 = vpop.f32.mrb[28].mxu0 }
0x1052   : > { %v1231_v56 = vadd.f32 %v1418_v37, %v1230_v55  ;;  %v1579_v57 = vpop.f32.mrb[29].mxu0 }
0x1053   : > { %v1233_v58 = vpop.f32.mrb[30].mxu0 }
0x1054   : > { %v1580_v59 = vpop.f32.mrb[31].mxu0  ;;  %v1236_v5 = vmul.f32 %v1231_v56, %v1860_v18 }
0x1055   : > { %v1308_v60 = vpop.f32.mrb[28].mxu1 }
0x1056   : > { %v1309_v61 = vadd.f32 %v1418_v37, %v1308_v60  ;;  %v1587_v62 = vpop.f32.mrb[29].mxu1  ;;  %v1237_v6 = vadd.f32 %v1236_v5, %v1847_v3 }
0x1057   : > { %v1311_v63 = vpop.f32.mrb[30].mxu1 }
0x1058   : > { %v1314_v0 = vmul.f32 %v1309_v61, %v1860_v18  ;;  %v1588_v1 = vpop.f32.mrb[31].mxu1 }
0x105a   : > { %v1315_v2 = vadd.f32 %v1314_v0, %v1847_v3 }
0x105c   : > { %1317 = vrot.lane.b32.xlu0 %v1315_v2, %s1737_s25  ;;  %s1669_s25 = sshll.u32 %s1738_s27, 4  ;;  %s1670_s25 = int_to_ptr.vmem [resolvable:$false] %s1669_s25 }
0x105d   : > { %s1671_s29 = scalar_lea.vmem %s1670_s25, 128  ;;  %p1672_p0 = scmp.lt.s32.totalorder %s2071_s12, %s1670_s25 }
0x105e   : > { %p1673_p1 = scmp.lt.s32.totalorder %s1671_s29, %s1665_s26 }
0x1060   : > { %p1674_p2 = por %p1673_p1, %p1672_p0 }
0x1062   : > { %p1675_p3 = pnand %p1674_p2, %p1668_p13 }
0x10ce   : > { %v1318_v7 = vpop.permute.xlu0 %1317 }
0x10cf   : > { %v1320_v9 = vsel %vm410_vm5, %v1237_v6, %v1318_v7 }
0x10d0   : > { %1322 = vst.msk [vmem:[%s350_s11] sm:$0xf] %vm1321_vm7, %v1320_v9 }
0x10d1   : > { %1678 = shalt.err (!%p1675_p3)
}
0x10d2   : > { %s1679_s28 = scalar_lea.hbm %s2069_s21, 64  ;;  %s1683_s20 = scalar_lea.hbm %s2122_s10, 128 }
0x10d3   : > { %p1680_p4 = scmp.ne.s32.totalorder %s2069_s21, %s1679_s28  ;;  %p1684_p9 = scmp.lt.u32.totalorder %s2069_s21, %s2122_s10 }
0x10d4   : > { %p1685_p10 = scmp.lt.u32.totalorder %s1683_s20, %s1679_s28  ;;  %p1687_p12 = scmp.lt.u32.totalorder %s1679_s28, %s2069_s21 }
0x10d5   : > { %p1681_p7 = pnand %p1680_p4, %p1832_p5 }
0x10d6   : > { %p1686_p11 = por %p1685_p10, %p1684_p9 }
0x10d7   : > { %p1682_p8 = pneg %p1681_p7 }
0x10d8   : > { %p1688_p13 = por %p1687_p12, %p1686_p11 }
0x10da   : > { %p1689_p0 = pnand %p1688_p13, %p1682_p8 }
0x10dc   : > { %1692 = shalt.err (!%p1689_p0)
}
0x10dd   : > { %1589 = dma.vmem_to_hbm [thread:$0]  (%p1832_p5), %s2071_s12, 64, %s2069_s21, %s1324_s17  }
0x10de PF: > { %p1595_p1 = scmp.ge.s32.totalorder %s1727_s16, 2  ;;  %s1349_s26 = sand.u32 1, %s1715_s13  }
0x10df   : > { %s1350_s25 = scalar_lea.sflag [#allocation3], %s1349_s26 }
0x10e0   : > { %p1592_p2 = pnand %p1595_p1, %p1836_p6 }
0x10e2   : > { %1710 = dma.done.wait (!%p1592_p2), %s1350_s25, 64  }
0x10e3   : > { %1712 = vsyncadd (!%p1592_p2), %s1350_s25, 4294967232  ;;  %p20_p3 = scmp.ge.s32.totalorder %s1819_s19, 4   ;;  %s2125_s13 = smov %s1719_s14 }
0x10e4   : > { %s2126_s14 = smov %s1723_s15  ;;  %s2127_s15 = smov %s1830_s22 }
0x10e5   : > { %s2128_s16 = smov %s1819_s19  ;;  %22 = sbr.rel (!%p20_p3) target bundleno = 3 (0x3), region = 95 }
0x10ec   :  { %1355 = vsyncpa [#allocation3], 1 }
0x10ed   :  { %1357 = vsyncpa [#allocation3 + $0x1], 1 }

</bundles_post_ra>
